<compile_context>
chip_gen: v6e
topology: v6e:2x2x1
jax: 0.10.0
libtpu: 0.0.40
codegen_flags: <defaults>
</compile_context>

<pallas_src>
import math
import functools

import jax
import jax.numpy as jnp
from jax.experimental import pallas as pl
from jax.experimental.pallas import tpu as pltpu

EPS = 1e-5


def _tanh_gelu(x):
    # tanh-approximate GELU (~torch GELU(approximate='tanh')); < ~3e-4 from the
    # exact erf GELU and runs on the EUP slot.
    c = jnp.float32(0.7978845608028654)  # sqrt(2/pi)
    return 0.5 * x * (1.0 + jnp.tanh(c * (x + 0.044715 * x * x * x)))


def transformer_block_kernel(
    xq_ref, xkv_ref, cosq_ref, sinq_ref, coskv_ref, sinkv_ref,
    wq_ref, wkv_ref, wu_ref, bu_ref,
    g1_ref, b1_ref, g2_ref, b2_ref,
    wff1_ref, bff1_ref, wff2_ref, bff2_ref,
    o_ref,
    q_s, m_s, l_s, acc_s,
    *, heads, head_dim, block_q, block_kv,
):
    f32, bf16 = jnp.float32, jnp.bfloat16
    hd = head_dim
    half = hd // 2
    k_tot = heads * hd

    qi = pl.program_id(1)
    ki = pl.program_id(2)
    nkv = pl.num_programs(2)
    q_start = qi * block_q
    kv_start = ki * block_kv

    def layernorm(v, g_ref, b_ref):
        mu = jnp.mean(v, axis=-1, keepdims=True)
        var = jnp.mean((v - mu) ** 2, axis=-1, keepdims=True)
        return (v - mu) * jax.lax.rsqrt(var + EPS) * g_ref[...] + b_ref[...]

    def rope(t, cosf, sinsgn):
        # rotate-half: pltpu.roll (XLU) when the head is a full lane multiple,
        # static-slice concat otherwise (sub-128 lane rolls are riskier to lower).
        if hd % 128 == 0:
            rot = pltpu.roll(t, shift=half, axis=-1)
        else:
            rot = jnp.concatenate([t[:, half:], t[:, :half]], axis=-1)
        return t * cosf + rot * sinsgn

    # -------- ki == 0 : project + rope Q (all heads, one dot), reset state ----
    @pl.when(ki == 0)
    def _init():
        xn_q = layernorm(xq_ref[...].astype(f32), g1_ref, b1_ref)
        # one fused (TQ,k)x(k,k) projection for ALL heads; softmax 1/sqrt(hd)
        # is baked into Wq on the host (rope is linear, so scaling commutes).
        q_all = jnp.dot(xn_q.astype(bf16), wq_ref[...], preferred_element_type=f32)
        cq, sq = cosq_ref[...], sinq_ref[...]
        for h in range(heads):
            q_s[h] = rope(q_all[:, h * hd:(h + 1) * hd], cq, sq).astype(bf16)
        m_s[...] = jnp.full(m_s.shape, -jnp.inf, dtype=f32)
        l_s[...] = jnp.zeros(l_s.shape, dtype=f32)
        acc_s[...] = jnp.zeros(acc_s.shape, dtype=f32)

    # -------- online-softmax update for this KV tile ---------------------------
    # causal: KV tiles strictly above this Q tile's diagonal band are skipped.
    @pl.when(kv_start <= q_start + (block_q - 1))
    def _update():
        xn_kv = layernorm(xkv_ref[...].astype(f32), g1_ref, b1_ref)
        # one fused (TK,k)x(k,2k) projection producing K|V for ALL heads.
        kv_all = jnp.dot(xn_kv.astype(bf16), wkv_ref[...], preferred_element_type=f32)
        ckv, skv = coskv_ref[...], sinkv_ref[...]

        # additive causal-mask bias built in-kernel (no (N,N) operand / DMA).
        # -1e30 (finite) keeps exp() NaN-free; the diagonal is always unmasked
        # so every query row has positive softmax mass.
        # TODO(synk): arbitrary (non-causal) masks would be streamed in as a
        # (TQ, TK) tile operand instead of this iota.
        rows = q_start + jax.lax.broadcasted_iota(jnp.int32, (block_q, block_kv), 0)
        cols = kv_start + jax.lax.broadcasted_iota(jnp.int32, (block_q, block_kv), 1)
        bias = jnp.where(rows >= cols, 0.0, -1e30).astype(f32)

        for h in range(heads):
            kh = rope(kv_all[:, h * hd:(h + 1) * hd], ckv, skv).astype(bf16)
            vh = kv_all[:, k_tot + h * hd:k_tot + (h + 1) * hd].astype(bf16)
            scores = jax.lax.dot_general(
                q_s[h], kh, dimension_numbers=(((1,), (1,)), ((), ())),
                preferred_element_type=f32) + bias                  # (TQ, TK)
            m_prev = m_s[h]
            m_new = jnp.maximum(m_prev, jnp.max(scores, axis=-1, keepdims=True))
            alpha = jnp.exp(m_prev - m_new)
            p = jnp.exp(scores - m_new)                              # one exp/elem
            l_s[h] = alpha * l_s[h] + jnp.sum(p, axis=-1, keepdims=True)
            m_s[h] = m_new
            col = slice(h * hd, (h + 1) * hd)                        # static lanes
            acc_s[:, col] = alpha * acc_s[:, col] + jnp.dot(
                p.astype(bf16), vh, preferred_element_type=f32)

    # -------- ki == last : unify heads (one k-deep dot), residuals, FFN -------
    @pl.when(ki == nkv - 1)
    def _finalize():
        xn_q = layernorm(xq_ref[...].astype(f32), g1_ref, b1_ref)
        for h in range(heads):
            col = slice(h * hd, (h + 1) * hd)
            acc_s[:, col] = acc_s[:, col] * pl.reciprocal(l_s[h], approx=True)
        # heads already sit lane-concatenated in acc_s -> ONE k-deep unify matmul.
        attended = jnp.dot(acc_s[...].astype(bf16), wu_ref[...],
                           preferred_element_type=f32) + bu_ref[...]
        x1 = xn_q + attended                       # residual from the NORMED x (as in torch)
        x2 = layernorm(x1, g2_ref, b2_ref)
        hdn = jnp.dot(x2.astype(bf16), wff1_ref[...],
                      preferred_element_type=f32) + bff1_ref[...]   # (TQ, 4k), row-chunked
        hdn = _tanh_gelu(hdn)
        ff = jnp.dot(hdn.astype(bf16), wff2_ref[...],
                     preferred_element_type=f32) + bff2_ref[...]
        # TODO(synk): dropout after attention / FFN is identity (eval mode only).
        o_ref[...] = (x2 + ff).astype(o_ref.dtype)


def transformer_block(x, cos, sin, params, *, heads, block_q=128, block_kv=128):
    b, N, k = x.shape
    assert k % heads == 0
    hd = k // heads
    assert hd % 2 == 0
    hdim = params["wff1"].shape[1]
    f32, bf16 = jnp.float32, jnp.bfloat16

    tq = min(block_q, N)
    tk = min(block_kv, N)
    assert N % tq == 0 and N % tk == 0
    assert (tq % 8 == 0) or tq == N
    assert (tk % 8 == 0) or tk == N
    nq, nkv = N // tq, N // tk

    # ---- host-side prep (cheap, folded under jit) ----
    # NOTE: at real model sizes k and head_dim should be lane multiples of 128
    # so every store is an unmasked lane-dense vst; the demo shapes (k=64,
    # hd=16) are intentionally tiny and remain lane-masked.
    scale = 1.0 / math.sqrt(hd)
    wq = (params["wq"] * scale).astype(bf16)                                 # (k, k)
    wkv = jnp.concatenate([params["wk"], params["wv"]], axis=1).astype(bf16)  # (k, 2k)
    wu = params["wu"].astype(bf16)                                           # (k, k)
    wff1 = params["wff1"].astype(bf16)
    wff2 = params["wff2"].astype(bf16)
    cosf = jnp.concatenate([cos, cos], axis=-1).astype(f32)                  # (N, hd)
    sinsgn = jnp.concatenate([-sin, sin], axis=-1).astype(f32)               # (N, hd)

    operands = (
        x, x, cosf, sinsgn, cosf, sinsgn,
        wq, wkv, wu, params["bu"].astype(f32),
        params["g1"].astype(f32), params["b1"].astype(f32),
        params["g2"].astype(f32), params["b2"].astype(f32),
        wff1, params["bff1"].astype(f32), wff2, params["bff2"].astype(f32),
    )

    # grid-invariant inputs: single-buffered (halves the constant VMEM footprint)
    def const_spec(shape):
        nd = len(shape)
        return pl.BlockSpec(shape, lambda b_, q_, kv_, _nd=nd: (0,) * _nd,
                            pipeline_mode=pl.Buffered(1))

    in_specs = [
        pl.BlockSpec((None, tq, k), lambda b_, q_, kv_: (b_, q_, 0)),   # x (Q rows)
        pl.BlockSpec((None, tk, k), lambda b_, q_, kv_: (b_, kv_, 0)),  # x (KV rows)
        pl.BlockSpec((tq, hd), lambda b_, q_, kv_: (q_, 0)),            # cos (Q rows)
        pl.BlockSpec((tq, hd), lambda b_, q_, kv_: (q_, 0)),            # sin (Q rows)
        pl.BlockSpec((tk, hd), lambda b_, q_, kv_: (kv_, 0)),           # cos (KV rows)
        pl.BlockSpec((tk, hd), lambda b_, q_, kv_: (kv_, 0)),           # sin (KV rows)
        const_spec((k, k)),         # Wq (all heads, prescaled)
        const_spec((k, 2 * k)),     # [Wk | Wv] (all heads)
        const_spec((k, k)),         # Wu
        const_spec((1, k)),         # bu
        const_spec((1, k)), const_spec((1, k)),      # norm1 gamma/beta
        const_spec((1, k)), const_spec((1, k)),      # norm2 gamma/beta
        const_spec((k, hdim)), const_spec((1, hdim)),
        const_spec((hdim, k)), const_spec((1, k)),
    ]
    out_spec = pl.BlockSpec((None, tq, k), lambda b_, q_, kv_: (b_, q_, 0))

    scratch = [
        pltpu.VMEM((heads, tq, hd), bf16),   # rope'd, pre-scaled Q per head
        pltpu.VMEM((heads, tq, 1), f32),     # running max m
        pltpu.VMEM((heads, tq, 1), f32),     # running denom l
        pltpu.VMEM((tq, k), f32),            # output accumulator (head slabs on lanes)
    ]

    # ---- VMEM budget: per-grid-step blocks x buffer count + scratch + temps ----
    def padded_bytes(shape, dtype):
        dims = [d for d in shape if d is not None]
        if len(dims) >= 1:
            dims[-1] = -(-dims[-1] // 128) * 128
        if len(dims) >= 2:
            dims[-2] = -(-dims[-2] // 8) * 8
        return math.prod(dims) * jnp.dtype(dtype).itemsize

    streamed = 2 * (padded_bytes((tq, k), x.dtype) + padded_bytes((tk, k), x.dtype)
                    + 2 * padded_bytes((tq, hd), f32) + 2 * padded_bytes((tk, hd), f32)
                    + padded_bytes((tq, k), x.dtype))                 # x_q, x_kv, tables, out
    consts = (padded_bytes((k, k), bf16) + padded_bytes((k, 2 * k), bf16)
              + padded_bytes((k, k), bf16) + padded_bytes((k, hdim), bf16)
              + padded_bytes((hdim, k), bf16)
              + 6 * padded_bytes((1, k), f32) + padded_bytes((1, hdim), f32))
    scratch_b = (padded_bytes((heads, tq, hd), bf16)
                 + 2 * padded_bytes((heads, tq, 1), f32)
                 + padded_bytes((tq, k), f32))
    temps = 2 * (padded_bytes((tk, 2 * k), f32) + padded_bytes((tq, tk), f32)
                 + padded_bytes((tq, hdim), f32) + 3 * padded_bytes((tq, k), f32))
    try:
        phys_vmem = int(pltpu.get_tpu_info().vmem_capacity_bytes)
    except Exception:
        phys_vmem = 64 << 20   # conservative: v7x physical VMEM per TensorCore
    vmem_limit = streamed + consts + scratch_b + temps + (2 << 20)
    vmem_limit = int(max(4 << 20, min(vmem_limit, phys_vmem - (8 << 20))))

    kernel = functools.partial(transformer_block_kernel, heads=heads, head_dim=hd,
                               block_q=tq, block_kv=tk)
    return pl.pallas_call(
        kernel,
        out_shape=jax.ShapeDtypeStruct((b, N, k), x.dtype),
        grid_spec=pltpu.PrefetchScalarGridSpec(
            num_scalar_prefetch=0,
            grid=(b, nq, nkv),                     # KV axis innermost
            in_specs=in_specs,
            out_specs=out_spec,
            scratch_shapes=scratch,
        ),
        compiler_params=pltpu.CompilerParams(
            dimension_semantics=("parallel", "parallel", "arbitrary"),
            vmem_limit_bytes=vmem_limit,
        ),
    )(*operands)


# ------------------- pure-JAX reference (f32, exact GELU) -------------------
def reference_block(x, mask, cos, sin, params, *, heads):
    b, N, k = x.shape
    s = k // heads

    def layernorm(v, g, b_):
        mu = jnp.mean(v, axis=-1, keepdims=True)
        var = jnp.mean((v - mu) ** 2, axis=-1, keepdims=True)
        return (v - mu) / jnp.sqrt(var + EPS) * g + b_

    def rope(t):  # (b, h, N, s)
        half = s // 2
        t1, t2 = t[..., :half], t[..., half:]
        c = cos[None, None]
        sn = sin[None, None]
        return jnp.concatenate([t1 * c - t2 * sn, t2 * c + t1 * sn], axis=-1)

    def erf_gelu(v):
        return 0.5 * v * (1.0 + jax.lax.erf(v / jnp.sqrt(jnp.float32(2.0))))

    xn = layernorm(x, params["g1"][0], params["b1"][0])
    q = (xn @ params["wq"]).reshape(b, N, heads, s).transpose(0, 2, 1, 3)
    kk = (xn @ params["wk"]).reshape(b, N, heads, s).transpose(0, 2, 1, 3)
    v = (xn @ params["wv"]).reshape(b, N, heads, s).transpose(0, 2, 1, 3)
    q, kk = rope(q), rope(kk)
    scores = jnp.einsum("bhnd,bhmd->bhnm", q, kk) / math.sqrt(s)
    scores = jnp.where(mask[None, None] == 0, -jnp.inf, scores)
    attn = jax.nn.softmax(scores, axis=-1)
    ho = jnp.einsum("bhnm,bhmd->bhnd", attn, v).transpose(0, 2, 1, 3).reshape(b, N, k)
    attended = ho @ params["wu"] + params["bu"][0]
    x1 = xn + attended
    x2 = layernorm(x1, params["g2"][0], params["b2"][0])
    ff = erf_gelu(x2 @ params["wff1"] + params["bff1"][0]) @ params["wff2"] + params["bff2"][0]
    return x2 + ff


if __name__ == "__main__":
    B, N, K, HEADS = 2, 16, 64, 4
    S = K // HEADS
    HDIM = 4 * K

    key = jax.random.PRNGKey(0)
    keys = jax.random.split(key, 16)

    def init(kf, shape, scale=0.05):
        return jax.random.normal(kf, shape, dtype=jnp.float32) * scale

    params = {
        # weights stored already transposed (in, out) so the kernel does x @ W
        "wq": init(keys[0], (K, K)),
        "wk": init(keys[1], (K, K)),
        "wv": init(keys[2], (K, K)),
        "wu": init(keys[3], (K, K)),
        "bu": init(keys[4], (1, K)),
        "g1": jnp.ones((1, K), jnp.float32),
        "b1": jnp.zeros((1, K), jnp.float32),
        "g2": jnp.ones((1, K), jnp.float32),
        "b2": jnp.zeros((1, K), jnp.float32),
        "wff1": init(keys[5], (K, HDIM)),
        "bff1": init(keys[6], (1, HDIM)),
        "wff2": init(keys[7], (HDIM, K)),
        "bff2": init(keys[8], (1, K)),
    }

    x = jax.random.normal(keys[9], (B, N, K), dtype=jnp.float32)

    # causal mask (reference only; the kernel builds it in-kernel via iota)
    mask = jnp.tril(jnp.ones((N, N), dtype=jnp.float32))

    # rotary tables (half width; wrapper builds full-width sign-baked tables)
    half = S // 2
    inv_freq = 1.0 / (10000.0 ** (jnp.arange(half, dtype=jnp.float32) / half))
    pos = jnp.arange(N, dtype=jnp.float32)
    angles = pos[:, None] * inv_freq[None, :]  # (N, half)
    cos_tab = jnp.cos(angles)
    sin_tab = jnp.sin(angles)

    # small blocks so the flash-tiled path (2 q tiles x 2 kv tiles) is exercised
    out = transformer_block(x, cos_tab, sin_tab, params, heads=HEADS,
                            block_q=8, block_kv=8)
    out = jax.block_until_ready(out)

    ref = reference_block(x, mask, cos_tab, sin_tab, params, heads=HEADS)
    assert out.shape == (B, N, K)
    max_err = jnp.max(jnp.abs(out - ref))
    # tolerance accounts for bf16 MXU operands, approx reciprocal and tanh GELU
    assert jnp.allclose(out, ref, rtol=2e-2, atol=2e-2), f"max err {max_err}"
    print("KERNEL_OK")
</pallas_src>

<mosaic_0001>
module attributes {stable_mosaic.version = 11 : i64} {
  func.func @transformer_block_kernel(%arg0: i32, %arg1: i32, %arg2: i32, %arg3: memref<1x8x64xf32, #tpu.memory_space<vmem>>, %arg4: memref<1x8x64xf32, #tpu.memory_space<vmem>>, %arg5: memref<8x16xf32, #tpu.memory_space<vmem>>, %arg6: memref<8x16xf32, #tpu.memory_space<vmem>>, %arg7: memref<8x16xf32, #tpu.memory_space<vmem>>, %arg8: memref<8x16xf32, #tpu.memory_space<vmem>>, %arg9: memref<64x64xbf16, #tpu.memory_space<vmem>>, %arg10: memref<64x128xbf16, #tpu.memory_space<vmem>>, %arg11: memref<64x64xbf16, #tpu.memory_space<vmem>>, %arg12: memref<1x64xf32, #tpu.memory_space<vmem>>, %arg13: memref<1x64xf32, #tpu.memory_space<vmem>>, %arg14: memref<1x64xf32, #tpu.memory_space<vmem>>, %arg15: memref<1x64xf32, #tpu.memory_space<vmem>>, %arg16: memref<1x64xf32, #tpu.memory_space<vmem>>, %arg17: memref<64x256xbf16, #tpu.memory_space<vmem>>, %arg18: memref<1x256xf32, #tpu.memory_space<vmem>>, %arg19: memref<256x64xbf16, #tpu.memory_space<vmem>>, %arg20: memref<1x64xf32, #tpu.memory_space<vmem>>, %arg21: memref<1x8x64xf32, #tpu.memory_space<vmem>>, %arg22: memref<4x8x16xbf16, #tpu.memory_space<vmem>>, %arg23: memref<4x8x1xf32, #tpu.memory_space<vmem>>, %arg24: memref<4x8x1xf32, #tpu.memory_space<vmem>>, %arg25: memref<8x64xf32, #tpu.memory_space<vmem>>) attributes {dimension_semantics = [#tpu.dimension_semantics<parallel>, #tpu.dimension_semantics<parallel>, #tpu.dimension_semantics<arbitrary>], iteration_bounds = array<i64: 2, 2, 2>, scalar_prefetch = 0 : i64, scratch_operands = 4 : i64, tpu.core_type = #tpu.core_type<tc>, window_params = [{transform_indices = @transform_0, window_bounds = array<i64: 1, 8, 64>}, {transform_indices = @transform_1, window_bounds = array<i64: 1, 8, 64>}, {transform_indices = @transform_2, window_bounds = array<i64: 8, 16>}, {transform_indices = @transform_3, window_bounds = array<i64: 8, 16>}, {transform_indices = @transform_4, window_bounds = array<i64: 8, 16>}, {transform_indices = @transform_5, window_bounds = array<i64: 8, 16>}, {pipeline_mode = #tpu.pipeline_mode<synchronous>, transform_indices = @transform_6, window_bounds = array<i64: 64, 64>}, {pipeline_mode = #tpu.pipeline_mode<synchronous>, transform_indices = @transform_7, window_bounds = array<i64: 64, 128>}, {pipeline_mode = #tpu.pipeline_mode<synchronous>, transform_indices = @transform_8, window_bounds = array<i64: 64, 64>}, {pipeline_mode = #tpu.pipeline_mode<synchronous>, transform_indices = @transform_9, window_bounds = array<i64: 1, 64>}, {pipeline_mode = #tpu.pipeline_mode<synchronous>, transform_indices = @transform_10, window_bounds = array<i64: 1, 64>}, {pipeline_mode = #tpu.pipeline_mode<synchronous>, transform_indices = @transform_11, window_bounds = array<i64: 1, 64>}, {pipeline_mode = #tpu.pipeline_mode<synchronous>, transform_indices = @transform_12, window_bounds = array<i64: 1, 64>}, {pipeline_mode = #tpu.pipeline_mode<synchronous>, transform_indices = @transform_13, window_bounds = array<i64: 1, 64>}, {pipeline_mode = #tpu.pipeline_mode<synchronous>, transform_indices = @transform_14, window_bounds = array<i64: 64, 256>}, {pipeline_mode = #tpu.pipeline_mode<synchronous>, transform_indices = @transform_15, window_bounds = array<i64: 1, 256>}, {pipeline_mode = #tpu.pipeline_mode<synchronous>, transform_indices = @transform_16, window_bounds = array<i64: 256, 64>}, {pipeline_mode = #tpu.pipeline_mode<synchronous>, transform_indices = @transform_17, window_bounds = array<i64: 1, 64>}, {transform_indices = @transform_18, window_bounds = array<i64: 1, 8, 64>}]} {
    %c8_i32 = arith.constant 8 : i32
    %0 = arith.muli %arg1, %c8_i32 : i32
    %c8_i32_0 = arith.constant 8 : i32
    %1 = arith.muli %arg2, %c8_i32_0 : i32
    %c0_i32 = arith.constant 0 : i32
    %2 = arith.cmpi eq, %arg2, %c0_i32 : i32
    %3 = arith.extui %2 : i1 to i32
    %c0_i32_1 = arith.constant 0 : i32
    %4 = arith.cmpi ne, %3, %c0_i32_1 : i32
    scf.if %4 {
      %c0 = arith.constant 0 : index
      %c0_4 = arith.constant 0 : index
      %c0_5 = arith.constant 0 : index
      %12 = vector.load %arg3[%c0, %c0_4, %c0_5] : memref<1x8x64xf32, #tpu.memory_space<vmem>>, vector<1x8x64xf32>
      %13 = vector.shape_cast %12 : vector<1x8x64xf32> to vector<8x64xf32>
      %cst = arith.constant dense<0.000000e+00> : vector<8xf32>
      %14 = vector.multi_reduction <add>, %13, %cst [1] : vector<8x64xf32> to vector<8xf32>
      %15 = vector.shape_cast %14 : vector<8xf32> to vector<8x1xf32>
      %cst_6 = arith.constant 6.400000e+01 : f32
      %16 = vector.broadcast %cst_6 : f32 to vector<8x1xf32>
      %17 = arith.divf %15, %16 : vector<8x1xf32>
      %18 = vector.broadcast %17 : vector<8x1xf32> to vector<8x64xf32>
      %19 = arith.subf %13, %18 : vector<8x64xf32>
      %20 = arith.mulf %19, %19 : vector<8x64xf32>
      %cst_7 = arith.constant dense<0.000000e+00> : vector<8xf32>
      %21 = vector.multi_reduction <add>, %20, %cst_7 [1] : vector<8x64xf32> to vector<8xf32>
      %22 = vector.shape_cast %21 : vector<8xf32> to vector<8x1xf32>
      %cst_8 = arith.constant 6.400000e+01 : f32
      %23 = vector.broadcast %cst_8 : f32 to vector<8x1xf32>
      %24 = arith.divf %22, %23 : vector<8x1xf32>
      %25 = vector.broadcast %17 : vector<8x1xf32> to vector<8x64xf32>
      %26 = arith.subf %13, %25 : vector<8x64xf32>
      %cst_9 = arith.constant 9.99999974E-6 : f32
      %27 = vector.broadcast %cst_9 : f32 to vector<8x1xf32>
      %28 = arith.addf %24, %27 : vector<8x1xf32>
      %29 = math.rsqrt %28 : vector<8x1xf32>
      %30 = vector.broadcast %29 : vector<8x1xf32> to vector<8x64xf32>
      %31 = arith.mulf %26, %30 : vector<8x64xf32>
      %c0_10 = arith.constant 0 : index
      %c0_11 = arith.constant 0 : index
      %32 = vector.load %arg13[%c0_10, %c0_11] : memref<1x64xf32, #tpu.memory_space<vmem>>, vector<1x64xf32>
      %33 = vector.broadcast %32 : vector<1x64xf32> to vector<8x64xf32>
      %34 = arith.mulf %31, %33 : vector<8x64xf32>
      %c0_12 = arith.constant 0 : index
      %c0_13 = arith.constant 0 : index
      %35 = vector.load %arg14[%c0_12, %c0_13] : memref<1x64xf32, #tpu.memory_space<vmem>>, vector<1x64xf32>
      %36 = vector.broadcast %35 : vector<1x64xf32> to vector<8x64xf32>
      %37 = arith.addf %34, %36 : vector<8x64xf32>
      %38 = arith.truncf %37 : vector<8x64xf32> to vector<8x64xbf16>
      %c0_14 = arith.constant 0 : index
      %c0_15 = arith.constant 0 : index
      %39 = vector.load %arg9[%c0_14, %c0_15] : memref<64x64xbf16, #tpu.memory_space<vmem>>, vector<64x64xbf16>
      %cst_16 = arith.constant dense<0.000000e+00> : vector<8x64xf32>
      %40 = tpu.matmul %38, %39, %cst_16 {dimension_numbers = #tpu.dot_dimension_numbers<[1], [0], [0], [1], [0, 0, 1, 1], [], []>} : vector<8x64xbf16>, vector<64x64xbf16>, vector<8x64xf32> -> vector<8x64xf32>
      %c0_17 = arith.constant 0 : index
      %c0_18 = arith.constant 0 : index
      %41 = vector.load %arg5[%c0_17, %c0_18] : memref<8x16xf32, #tpu.memory_space<vmem>>, vector<8x16xf32>
      %c0_19 = arith.constant 0 : index
      %c0_20 = arith.constant 0 : index
      %42 = vector.load %arg6[%c0_19, %c0_20] : memref<8x16xf32, #tpu.memory_space<vmem>>, vector<8x16xf32>
      %43 = vector.extract_strided_slice %40 {offsets = [0, 0], sizes = [8, 16], strides = [1, 1]} : vector<8x64xf32> to vector<8x16xf32>
      %44 = vector.extract_strided_slice %43 {offsets = [0, 8], sizes = [8, 8], strides = [1, 1]} : vector<8x16xf32> to vector<8x8xf32>
      %45 = vector.extract_strided_slice %43 {offsets = [0, 0], sizes = [8, 8], strides = [1, 1]} : vector<8x16xf32> to vector<8x8xf32>
      %46 = tpu.concatenate %44, %45 in 1 : vector<8x8xf32>, vector<8x8xf32> -> vector<8x16xf32>
      %47 = arith.mulf %43, %41 : vector<8x16xf32>
      %48 = arith.mulf %46, %42 : vector<8x16xf32>
      %49 = arith.addf %47, %48 : vector<8x16xf32>
      %50 = arith.truncf %49 : vector<8x16xf32> to vector<8x16xbf16>
      %c0_21 = arith.constant 0 : index
      %c0_22 = arith.constant 0 : index
      %c0_23 = arith.constant 0 : index
      %51 = vector.load %arg22[%c0_21, %c0_22, %c0_23] : memref<4x8x16xbf16, #tpu.memory_space<vmem>>, vector<1x8x16xbf16>
      %52 = vector.shape_cast %51 : vector<1x8x16xbf16> to vector<8x16xbf16>
      %53 = vector.shape_cast %50 : vector<8x16xbf16> to vector<1x8x16xbf16>
      tpu.vector_store %arg22[%c0_21, %c0_22, %c0_23], %53 {strides = array<i32>} : memref<4x8x16xbf16, #tpu.memory_space<vmem>>, vector<1x8x16xbf16>,
      %54 = vector.extract_strided_slice %40 {offsets = [0, 16], sizes = [8, 16], strides = [1, 1]} : vector<8x64xf32> to vector<8x16xf32>
      %55 = vector.extract_strided_slice %54 {offsets = [0, 8], sizes = [8, 8], strides = [1, 1]} : vector<8x16xf32> to vector<8x8xf32>
      %56 = vector.extract_strided_slice %54 {offsets = [0, 0], sizes = [8, 8], strides = [1, 1]} : vector<8x16xf32> to vector<8x8xf32>
      %57 = tpu.concatenate %55, %56 in 1 : vector<8x8xf32>, vector<8x8xf32> -> vector<8x16xf32>
      %58 = arith.mulf %54, %41 : vector<8x16xf32>
      %59 = arith.mulf %57, %42 : vector<8x16xf32>
      %60 = arith.addf %58, %59 : vector<8x16xf32>
      %61 = arith.truncf %60 : vector<8x16xf32> to vector<8x16xbf16>
      %c1 = arith.constant 1 : index
      %c0_24 = arith.constant 0 : index
      %c0_25 = arith.constant 0 : index
      %62 = vector.load %arg22[%c1, %c0_24, %c0_25] : memref<4x8x16xbf16, #tpu.memory_space<vmem>>, vector<1x8x16xbf16>
      %63 = vector.shape_cast %62 : vector<1x8x16xbf16> to vector<8x16xbf16>
      %64 = vector.shape_cast %61 : vector<8x16xbf16> to vector<1x8x16xbf16>
      tpu.vector_store %arg22[%c1, %c0_24, %c0_25], %64 {strides = array<i32>} : memref<4x8x16xbf16, #tpu.memory_space<vmem>>, vector<1x8x16xbf16>,
      %65 = vector.extract_strided_slice %40 {offsets = [0, 32], sizes = [8, 16], strides = [1, 1]} : vector<8x64xf32> to vector<8x16xf32>
      %66 = vector.extract_strided_slice %65 {offsets = [0, 8], sizes = [8, 8], strides = [1, 1]} : vector<8x16xf32> to vector<8x8xf32>
      %67 = vector.extract_strided_slice %65 {offsets = [0, 0], sizes = [8, 8], strides = [1, 1]} : vector<8x16xf32> to vector<8x8xf32>
      %68 = tpu.concatenate %66, %67 in 1 : vector<8x8xf32>, vector<8x8xf32> -> vector<8x16xf32>
      %69 = arith.mulf %65, %41 : vector<8x16xf32>
      %70 = arith.mulf %68, %42 : vector<8x16xf32>
      %71 = arith.addf %69, %70 : vector<8x16xf32>
      %72 = arith.truncf %71 : vector<8x16xf32> to vector<8x16xbf16>
      %c2 = arith.constant 2 : index
      %c0_26 = arith.constant 0 : index
      %c0_27 = arith.constant 0 : index
      %73 = vector.load %arg22[%c2, %c0_26, %c0_27] : memref<4x8x16xbf16, #tpu.memory_space<vmem>>, vector<1x8x16xbf16>
      %74 = vector.shape_cast %73 : vector<1x8x16xbf16> to vector<8x16xbf16>
      %75 = vector.shape_cast %72 : vector<8x16xbf16> to vector<1x8x16xbf16>
      tpu.vector_store %arg22[%c2, %c0_26, %c0_27], %75 {strides = array<i32>} : memref<4x8x16xbf16, #tpu.memory_space<vmem>>, vector<1x8x16xbf16>,
      %76 = vector.extract_strided_slice %40 {offsets = [0, 48], sizes = [8, 16], strides = [1, 1]} : vector<8x64xf32> to vector<8x16xf32>
      %77 = vector.extract_strided_slice %76 {offsets = [0, 8], sizes = [8, 8], strides = [1, 1]} : vector<8x16xf32> to vector<8x8xf32>
      %78 = vector.extract_strided_slice %76 {offsets = [0, 0], sizes = [8, 8], strides = [1, 1]} : vector<8x16xf32> to vector<8x8xf32>
      %79 = tpu.concatenate %77, %78 in 1 : vector<8x8xf32>, vector<8x8xf32> -> vector<8x16xf32>
      %80 = arith.mulf %76, %41 : vector<8x16xf32>
      %81 = arith.mulf %79, %42 : vector<8x16xf32>
      %82 = arith.addf %80, %81 : vector<8x16xf32>
      %83 = arith.truncf %82 : vector<8x16xf32> to vector<8x16xbf16>
      %c3 = arith.constant 3 : index
      %c0_28 = arith.constant 0 : index
      %c0_29 = arith.constant 0 : index
      %84 = vector.load %arg22[%c3, %c0_28, %c0_29] : memref<4x8x16xbf16, #tpu.memory_space<vmem>>, vector<1x8x16xbf16>
      %85 = vector.shape_cast %84 : vector<1x8x16xbf16> to vector<8x16xbf16>
      %86 = vector.shape_cast %83 : vector<8x16xbf16> to vector<1x8x16xbf16>
      tpu.vector_store %arg22[%c3, %c0_28, %c0_29], %86 {strides = array<i32>} : memref<4x8x16xbf16, #tpu.memory_space<vmem>>, vector<1x8x16xbf16>,
      %cst_30 = arith.constant 0xFF800000 : f32
      %87 = vector.broadcast %cst_30 : f32 to vector<4x8x1xf32>
      %c0_31 = arith.constant 0 : index
      %c0_32 = arith.constant 0 : index
      %c0_33 = arith.constant 0 : index
      %88 = vector.load %arg23[%c0_31, %c0_32, %c0_33] : memref<4x8x1xf32, #tpu.memory_space<vmem>>, vector<4x8x1xf32>
      tpu.vector_store %arg23[%c0_31, %c0_32, %c0_33], %87 {strides = array<i32>} : memref<4x8x1xf32, #tpu.memory_space<vmem>>, vector<4x8x1xf32>,
      %cst_34 = arith.constant 0.000000e+00 : f32
      %89 = vector.broadcast %cst_34 : f32 to vector<4x8x1xf32>
      %c0_35 = arith.constant 0 : index
      %c0_36 = arith.constant 0 : index
      %c0_37 = arith.constant 0 : index
      %90 = vector.load %arg24[%c0_35, %c0_36, %c0_37] : memref<4x8x1xf32, #tpu.memory_space<vmem>>, vector<4x8x1xf32>
      tpu.vector_store %arg24[%c0_35, %c0_36, %c0_37], %89 {strides = array<i32>} : memref<4x8x1xf32, #tpu.memory_space<vmem>>, vector<4x8x1xf32>,
      %cst_38 = arith.constant 0.000000e+00 : f32
      %91 = vector.broadcast %cst_38 : f32 to vector<8x64xf32>
      %c0_39 = arith.constant 0 : index
      %c0_40 = arith.constant 0 : index
      %92 = vector.load %arg25[%c0_39, %c0_40] : memref<8x64xf32, #tpu.memory_space<vmem>>, vector<8x64xf32>
      tpu.vector_store %arg25[%c0_39, %c0_40], %91 {strides = array<i32>} : memref<8x64xf32, #tpu.memory_space<vmem>>, vector<8x64xf32>,
    } else {
    }
    %c7_i32 = arith.constant 7 : i32
    %5 = arith.addi %0, %c7_i32 : i32
    %6 = arith.cmpi sle, %1, %5 : i32
    %7 = arith.extui %6 : i1 to i32
    %c0_i32_2 = arith.constant 0 : i32
    %8 = arith.cmpi ne, %7, %c0_i32_2 : i32
    scf.if %8 {
      %c0 = arith.constant 0 : index
      %c0_4 = arith.constant 0 : index
      %c0_5 = arith.constant 0 : index
      %12 = vector.load %arg4[%c0, %c0_4, %c0_5] : memref<1x8x64xf32, #tpu.memory_space<vmem>>, vector<1x8x64xf32>
      %13 = vector.shape_cast %12 : vector<1x8x64xf32> to vector<8x64xf32>
      %cst = arith.constant dense<0.000000e+00> : vector<8xf32>
      %14 = vector.multi_reduction <add>, %13, %cst [1] : vector<8x64xf32> to vector<8xf32>
      %15 = vector.shape_cast %14 : vector<8xf32> to vector<8x1xf32>
      %cst_6 = arith.constant 6.400000e+01 : f32
      %16 = vector.broadcast %cst_6 : f32 to vector<8x1xf32>
      %17 = arith.divf %15, %16 : vector<8x1xf32>
      %18 = vector.broadcast %17 : vector<8x1xf32> to vector<8x64xf32>
      %19 = arith.subf %13, %18 : vector<8x64xf32>
      %20 = arith.mulf %19, %19 : vector<8x64xf32>
      %cst_7 = arith.constant dense<0.000000e+00> : vector<8xf32>
      %21 = vector.multi_reduction <add>, %20, %cst_7 [1] : vector<8x64xf32> to vector<8xf32>
      %22 = vector.shape_cast %21 : vector<8xf32> to vector<8x1xf32>
      %cst_8 = arith.constant 6.400000e+01 : f32
      %23 = vector.broadcast %cst_8 : f32 to vector<8x1xf32>
      %24 = arith.divf %22, %23 : vector<8x1xf32>
      %25 = vector.broadcast %17 : vector<8x1xf32> to vector<8x64xf32>
      %26 = arith.subf %13, %25 : vector<8x64xf32>
      %cst_9 = arith.constant 9.99999974E-6 : f32
      %27 = vector.broadcast %cst_9 : f32 to vector<8x1xf32>
      %28 = arith.addf %24, %27 : vector<8x1xf32>
      %29 = math.rsqrt %28 : vector<8x1xf32>
      %30 = vector.broadcast %29 : vector<8x1xf32> to vector<8x64xf32>
      %31 = arith.mulf %26, %30 : vector<8x64xf32>
      %c0_10 = arith.constant 0 : index
      %c0_11 = arith.constant 0 : index
      %32 = vector.load %arg13[%c0_10, %c0_11] : memref<1x64xf32, #tpu.memory_space<vmem>>, vector<1x64xf32>
      %33 = vector.broadcast %32 : vector<1x64xf32> to vector<8x64xf32>
      %34 = arith.mulf %31, %33 : vector<8x64xf32>
      %c0_12 = arith.constant 0 : index
      %c0_13 = arith.constant 0 : index
      %35 = vector.load %arg14[%c0_12, %c0_13] : memref<1x64xf32, #tpu.memory_space<vmem>>, vector<1x64xf32>
      %36 = vector.broadcast %35 : vector<1x64xf32> to vector<8x64xf32>
      %37 = arith.addf %34, %36 : vector<8x64xf32>
      %38 = arith.truncf %37 : vector<8x64xf32> to vector<8x64xbf16>
      %c0_14 = arith.constant 0 : index
      %c0_15 = arith.constant 0 : index
      %39 = vector.load %arg10[%c0_14, %c0_15] : memref<64x128xbf16, #tpu.memory_space<vmem>>, vector<64x128xbf16>
      %cst_16 = arith.constant dense<0.000000e+00> : vector<8x128xf32>
      %40 = tpu.matmul %38, %39, %cst_16 {dimension_numbers = #tpu.dot_dimension_numbers<[1], [0], [0], [1], [0, 0, 1, 1], [], []>} : vector<8x64xbf16>, vector<64x128xbf16>, vector<8x128xf32> -> vector<8x128xf32>
      %c0_17 = arith.constant 0 : index
      %c0_18 = arith.constant 0 : index
      %41 = vector.load %arg7[%c0_17, %c0_18] : memref<8x16xf32, #tpu.memory_space<vmem>>, vector<8x16xf32>
      %c0_19 = arith.constant 0 : index
      %c0_20 = arith.constant 0 : index
      %42 = vector.load %arg8[%c0_19, %c0_20] : memref<8x16xf32, #tpu.memory_space<vmem>>, vector<8x16xf32>
      %43 = tpu.iota {dimensions = array<i32: 0>} : vector<8x8xi32>
      %44 = vector.broadcast %0 : i32 to vector<8x8xi32>
      %45 = arith.addi %44, %43 : vector<8x8xi32>
      %46 = tpu.iota {dimensions = array<i32: 1>} : vector<8x8xi32>
      %47 = vector.broadcast %1 : i32 to vector<8x8xi32>
      %48 = arith.addi %47, %46 : vector<8x8xi32>
      %49 = arith.cmpi sge, %45, %48 : vector<8x8xi32>
      %cst_21 = arith.constant 0.000000e+00 : f32
      %cst_22 = arith.constant -1.000000e+30 : f32
      %50 = vector.broadcast %cst_21 : f32 to vector<8x8xf32>
      %51 = vector.broadcast %cst_22 : f32 to vector<8x8xf32>
      %52 = arith.select %49, %50, %51 : vector<8x8xi1>, vector<8x8xf32>
      %53 = vector.extract_strided_slice %40 {offsets = [0, 0], sizes = [8, 16], strides = [1, 1]} : vector<8x128xf32> to vector<8x16xf32>
      %54 = vector.extract_strided_slice %53 {offsets = [0, 8], sizes = [8, 8], strides = [1, 1]} : vector<8x16xf32> to vector<8x8xf32>
      %55 = vector.extract_strided_slice %53 {offsets = [0, 0], sizes = [8, 8], strides = [1, 1]} : vector<8x16xf32> to vector<8x8xf32>
      %56 = tpu.concatenate %54, %55 in 1 : vector<8x8xf32>, vector<8x8xf32> -> vector<8x16xf32>
      %57 = arith.mulf %53, %41 : vector<8x16xf32>
      %58 = arith.mulf %56, %42 : vector<8x16xf32>
      %59 = arith.addf %57, %58 : vector<8x16xf32>
      %60 = arith.truncf %59 : vector<8x16xf32> to vector<8x16xbf16>
      %61 = vector.extract_strided_slice %40 {offsets = [0, 64], sizes = [8, 16], strides = [1, 1]} : vector<8x128xf32> to vector<8x16xf32>
      %62 = arith.truncf %61 : vector<8x16xf32> to vector<8x16xbf16>
      %c0_23 = arith.constant 0 : index
      %c0_24 = arith.constant 0 : index
      %c0_25 = arith.constant 0 : index
      %63 = vector.load %arg22[%c0_23, %c0_24, %c0_25] : memref<4x8x16xbf16, #tpu.memory_space<vmem>>, vector<1x8x16xbf16>
      %64 = vector.shape_cast %63 : vector<1x8x16xbf16> to vector<8x16xbf16>
      %cst_26 = arith.constant dense<0.000000e+00> : vector<8x8xf32>
      %65 = tpu.matmul %64, %60, %cst_26 {dimension_numbers = #tpu.dot_dimension_numbers<[1], [1], [0], [0], [0, 0, 1, 0], [], []>} : vector<8x16xbf16>, vector<8x16xbf16>, vector<8x8xf32> -> vector<8x8xf32>
      %66 = arith.addf %65, %52 : vector<8x8xf32>
      %c0_27 = arith.constant 0 : index
      %c0_28 = arith.constant 0 : index
      %c0_29 = arith.constant 0 : index
      %67 = vector.load %arg23[%c0_27, %c0_28, %c0_29] : memref<4x8x1xf32, #tpu.memory_space<vmem>>, vector<1x8x1xf32>
      %68 = vector.shape_cast %67 : vector<1x8x1xf32> to vector<8x1xf32>
      %cst_30 = arith.constant dense<0xFF800000> : vector<8xf32>
      %69 = vector.multi_reduction <maximumf>, %66, %cst_30 [1] : vector<8x8xf32> to vector<8xf32>
      %70 = vector.shape_cast %69 : vector<8xf32> to vector<8x1xf32>
      %71 = arith.maximumf %68, %70 : vector<8x1xf32>
      %72 = arith.subf %68, %71 : vector<8x1xf32>
      %73 = math.exp %72 : vector<8x1xf32>
      %74 = vector.broadcast %71 : vector<8x1xf32> to vector<8x8xf32>
      %75 = arith.subf %66, %74 : vector<8x8xf32>
      %76 = math.exp %75 : vector<8x8xf32>
      %c0_31 = arith.constant 0 : index
      %c0_32 = arith.constant 0 : index
      %c0_33 = arith.constant 0 : index
      %77 = vector.load %arg24[%c0_31, %c0_32, %c0_33] : memref<4x8x1xf32, #tpu.memory_space<vmem>>, vector<1x8x1xf32>
      %78 = vector.shape_cast %77 : vector<1x8x1xf32> to vector<8x1xf32>
      %79 = arith.mulf %73, %78 : vector<8x1xf32>
      %cst_34 = arith.constant dense<0.000000e+00> : vector<8xf32>
      %80 = vector.multi_reduction <add>, %76, %cst_34 [1] : vector<8x8xf32> to vector<8xf32>
      %81 = vector.shape_cast %80 : vector<8xf32> to vector<8x1xf32>
      %82 = arith.addf %79, %81 : vector<8x1xf32>
      %c0_35 = arith.constant 0 : index
      %c0_36 = arith.constant 0 : index
      %c0_37 = arith.constant 0 : index
      %83 = vector.load %arg24[%c0_35, %c0_36, %c0_37] : memref<4x8x1xf32, #tpu.memory_space<vmem>>, vector<1x8x1xf32>
      %84 = vector.shape_cast %83 : vector<1x8x1xf32> to vector<8x1xf32>
      %85 = vector.shape_cast %82 : vector<8x1xf32> to vector<1x8x1xf32>
      tpu.vector_store %arg24[%c0_35, %c0_36, %c0_37], %85 {strides = array<i32>} : memref<4x8x1xf32, #tpu.memory_space<vmem>>, vector<1x8x1xf32>,
      %c0_38 = arith.constant 0 : index
      %c0_39 = arith.constant 0 : index
      %c0_40 = arith.constant 0 : index
      %86 = vector.load %arg23[%c0_38, %c0_39, %c0_40] : memref<4x8x1xf32, #tpu.memory_space<vmem>>, vector<1x8x1xf32>
      %87 = vector.shape_cast %86 : vector<1x8x1xf32> to vector<8x1xf32>
      %88 = vector.shape_cast %71 : vector<8x1xf32> to vector<1x8x1xf32>
      tpu.vector_store %arg23[%c0_38, %c0_39, %c0_40], %88 {strides = array<i32>} : memref<4x8x1xf32, #tpu.memory_space<vmem>>, vector<1x8x1xf32>,
      %c0_41 = arith.constant 0 : index
      %c0_42 = arith.constant 0 : index
      %89 = vector.load %arg25[%c0_41, %c0_42] : memref<8x64xf32, #tpu.memory_space<vmem>>, vector<8x16xf32>
      %90 = vector.broadcast %73 : vector<8x1xf32> to vector<8x16xf32>
      %91 = arith.mulf %90, %89 : vector<8x16xf32>
      %92 = arith.truncf %76 : vector<8x8xf32> to vector<8x8xbf16>
      %cst_43 = arith.constant dense<0.000000e+00> : vector<8x16xf32>
      %93 = tpu.matmul %92, %62, %cst_43 {dimension_numbers = #tpu.dot_dimension_numbers<[1], [0], [0], [1], [0, 0, 1, 1], [], []>} : vector<8x8xbf16>, vector<8x16xbf16>, vector<8x16xf32> -> vector<8x16xf32>
      %94 = arith.addf %91, %93 : vector<8x16xf32>
      %c0_44 = arith.constant 0 : index
      %c0_45 = arith.constant 0 : index
      %95 = vector.load %arg25[%c0_44, %c0_45] : memref<8x64xf32, #tpu.memory_space<vmem>>, vector<8x16xf32>
      tpu.vector_store %arg25[%c0_44, %c0_45], %94 {strides = array<i32>} : memref<8x64xf32, #tpu.memory_space<vmem>>, vector<8x16xf32>,
      %96 = vector.extract_strided_slice %40 {offsets = [0, 16], sizes = [8, 16], strides = [1, 1]} : vector<8x128xf32> to vector<8x16xf32>
      %97 = vector.extract_strided_slice %96 {offsets = [0, 8], sizes = [8, 8], strides = [1, 1]} : vector<8x16xf32> to vector<8x8xf32>
      %98 = vector.extract_strided_slice %96 {offsets = [0, 0], sizes = [8, 8], strides = [1, 1]} : vector<8x16xf32> to vector<8x8xf32>
      %99 = tpu.concatenate %97, %98 in 1 : vector<8x8xf32>, vector<8x8xf32> -> vector<8x16xf32>
      %100 = arith.mulf %96, %41 : vector<8x16xf32>
      %101 = arith.mulf %99, %42 : vector<8x16xf32>
      %102 = arith.addf %100, %101 : vector<8x16xf32>
      %103 = arith.truncf %102 : vector<8x16xf32> to vector<8x16xbf16>
      %104 = vector.extract_strided_slice %40 {offsets = [0, 80], sizes = [8, 16], strides = [1, 1]} : vector<8x128xf32> to vector<8x16xf32>
      %105 = arith.truncf %104 : vector<8x16xf32> to vector<8x16xbf16>
      %c1 = arith.constant 1 : index
      %c0_46 = arith.constant 0 : index
      %c0_47 = arith.constant 0 : index
      %106 = vector.load %arg22[%c1, %c0_46, %c0_47] : memref<4x8x16xbf16, #tpu.memory_space<vmem>>, vector<1x8x16xbf16>
      %107 = vector.shape_cast %106 : vector<1x8x16xbf16> to vector<8x16xbf16>
      %cst_48 = arith.constant dense<0.000000e+00> : vector<8x8xf32>
      %108 = tpu.matmul %107, %103, %cst_48 {dimension_numbers = #tpu.dot_dimension_numbers<[1], [1], [0], [0], [0, 0, 1, 0], [], []>} : vector<8x16xbf16>, vector<8x16xbf16>, vector<8x8xf32> -> vector<8x8xf32>
      %109 = arith.addf %108, %52 : vector<8x8xf32>
      %c1_49 = arith.constant 1 : index
      %c0_50 = arith.constant 0 : index
      %c0_51 = arith.constant 0 : index
      %110 = vector.load %arg23[%c1_49, %c0_50, %c0_51] : memref<4x8x1xf32, #tpu.memory_space<vmem>>, vector<1x8x1xf32>
      %111 = vector.shape_cast %110 : vector<1x8x1xf32> to vector<8x1xf32>
      %cst_52 = arith.constant dense<0xFF800000> : vector<8xf32>
      %112 = vector.multi_reduction <maximumf>, %109, %cst_52 [1] : vector<8x8xf32> to vector<8xf32>
      %113 = vector.shape_cast %112 : vector<8xf32> to vector<8x1xf32>
      %114 = arith.maximumf %111, %113 : vector<8x1xf32>
      %115 = arith.subf %111, %114 : vector<8x1xf32>
      %116 = math.exp %115 : vector<8x1xf32>
      %117 = vector.broadcast %114 : vector<8x1xf32> to vector<8x8xf32>
      %118 = arith.subf %109, %117 : vector<8x8xf32>
      %119 = math.exp %118 : vector<8x8xf32>
      %c1_53 = arith.constant 1 : index
      %c0_54 = arith.constant 0 : index
      %c0_55 = arith.constant 0 : index
      %120 = vector.load %arg24[%c1_53, %c0_54, %c0_55] : memref<4x8x1xf32, #tpu.memory_space<vmem>>, vector<1x8x1xf32>
      %121 = vector.shape_cast %120 : vector<1x8x1xf32> to vector<8x1xf32>
      %122 = arith.mulf %116, %121 : vector<8x1xf32>
      %cst_56 = arith.constant dense<0.000000e+00> : vector<8xf32>
      %123 = vector.multi_reduction <add>, %119, %cst_56 [1] : vector<8x8xf32> to vector<8xf32>
      %124 = vector.shape_cast %123 : vector<8xf32> to vector<8x1xf32>
      %125 = arith.addf %122, %124 : vector<8x1xf32>
      %c1_57 = arith.constant 1 : index
      %c0_58 = arith.constant 0 : index
      %c0_59 = arith.constant 0 : index
      %126 = vector.load %arg24[%c1_57, %c0_58, %c0_59] : memref<4x8x1xf32, #tpu.memory_space<vmem>>, vector<1x8x1xf32>
      %127 = vector.shape_cast %126 : vector<1x8x1xf32> to vector<8x1xf32>
      %128 = vector.shape_cast %125 : vector<8x1xf32> to vector<1x8x1xf32>
      tpu.vector_store %arg24[%c1_57, %c0_58, %c0_59], %128 {strides = array<i32>} : memref<4x8x1xf32, #tpu.memory_space<vmem>>, vector<1x8x1xf32>,
      %c1_60 = arith.constant 1 : index
      %c0_61 = arith.constant 0 : index
      %c0_62 = arith.constant 0 : index
      %129 = vector.load %arg23[%c1_60, %c0_61, %c0_62] : memref<4x8x1xf32, #tpu.memory_space<vmem>>, vector<1x8x1xf32>
      %130 = vector.shape_cast %129 : vector<1x8x1xf32> to vector<8x1xf32>
      %131 = vector.shape_cast %114 : vector<8x1xf32> to vector<1x8x1xf32>
      tpu.vector_store %arg23[%c1_60, %c0_61, %c0_62], %131 {strides = array<i32>} : memref<4x8x1xf32, #tpu.memory_space<vmem>>, vector<1x8x1xf32>,
      %c0_63 = arith.constant 0 : index
      %c16 = arith.constant 16 : index
      %132 = vector.load %arg25[%c0_63, %c16] : memref<8x64xf32, #tpu.memory_space<vmem>>, vector<8x16xf32>
      %133 = vector.broadcast %116 : vector<8x1xf32> to vector<8x16xf32>
      %134 = arith.mulf %133, %132 : vector<8x16xf32>
      %135 = arith.truncf %119 : vector<8x8xf32> to vector<8x8xbf16>
      %cst_64 = arith.constant dense<0.000000e+00> : vector<8x16xf32>
      %136 = tpu.matmul %135, %105, %cst_64 {dimension_numbers = #tpu.dot_dimension_numbers<[1], [0], [0], [1], [0, 0, 1, 1], [], []>} : vector<8x8xbf16>, vector<8x16xbf16>, vector<8x16xf32> -> vector<8x16xf32>
      %137 = arith.addf %134, %136 : vector<8x16xf32>
      %c0_65 = arith.constant 0 : index
      %c16_66 = arith.constant 16 : index
      %138 = vector.load %arg25[%c0_65, %c16_66] : memref<8x64xf32, #tpu.memory_space<vmem>>, vector<8x16xf32>
      tpu.vector_store %arg25[%c0_65, %c16_66], %137 {strides = array<i32>} : memref<8x64xf32, #tpu.memory_space<vmem>>, vector<8x16xf32>,
      %139 = vector.extract_strided_slice %40 {offsets = [0, 32], sizes = [8, 16], strides = [1, 1]} : vector<8x128xf32> to vector<8x16xf32>
      %140 = vector.extract_strided_slice %139 {offsets = [0, 8], sizes = [8, 8], strides = [1, 1]} : vector<8x16xf32> to vector<8x8xf32>
      %141 = vector.extract_strided_slice %139 {offsets = [0, 0], sizes = [8, 8], strides = [1, 1]} : vector<8x16xf32> to vector<8x8xf32>
      %142 = tpu.concatenate %140, %141 in 1 : vector<8x8xf32>, vector<8x8xf32> -> vector<8x16xf32>
      %143 = arith.mulf %139, %41 : vector<8x16xf32>
      %144 = arith.mulf %142, %42 : vector<8x16xf32>
      %145 = arith.addf %143, %144 : vector<8x16xf32>
      %146 = arith.truncf %145 : vector<8x16xf32> to vector<8x16xbf16>
      %147 = vector.extract_strided_slice %40 {offsets = [0, 96], sizes = [8, 16], strides = [1, 1]} : vector<8x128xf32> to vector<8x16xf32>
      %148 = arith.truncf %147 : vector<8x16xf32> to vector<8x16xbf16>
      %c2 = arith.constant 2 : index
      %c0_67 = arith.constant 0 : index
      %c0_68 = arith.constant 0 : index
      %149 = vector.load %arg22[%c2, %c0_67, %c0_68] : memref<4x8x16xbf16, #tpu.memory_space<vmem>>, vector<1x8x16xbf16>
      %150 = vector.shape_cast %149 : vector<1x8x16xbf16> to vector<8x16xbf16>
      %cst_69 = arith.constant dense<0.000000e+00> : vector<8x8xf32>
      %151 = tpu.matmul %150, %146, %cst_69 {dimension_numbers = #tpu.dot_dimension_numbers<[1], [1], [0], [0], [0, 0, 1, 0], [], []>} : vector<8x16xbf16>, vector<8x16xbf16>, vector<8x8xf32> -> vector<8x8xf32>
      %152 = arith.addf %151, %52 : vector<8x8xf32>
      %c2_70 = arith.constant 2 : index
      %c0_71 = arith.constant 0 : index
      %c0_72 = arith.constant 0 : index
      %153 = vector.load %arg23[%c2_70, %c0_71, %c0_72] : memref<4x8x1xf32, #tpu.memory_space<vmem>>, vector<1x8x1xf32>
      %154 = vector.shape_cast %153 : vector<1x8x1xf32> to vector<8x1xf32>
      %cst_73 = arith.constant dense<0xFF800000> : vector<8xf32>
      %155 = vector.multi_reduction <maximumf>, %152, %cst_73 [1] : vector<8x8xf32> to vector<8xf32>
      %156 = vector.shape_cast %155 : vector<8xf32> to vector<8x1xf32>
      %157 = arith.maximumf %154, %156 : vector<8x1xf32>
      %158 = arith.subf %154, %157 : vector<8x1xf32>
      %159 = math.exp %158 : vector<8x1xf32>
      %160 = vector.broadcast %157 : vector<8x1xf32> to vector<8x8xf32>
      %161 = arith.subf %152, %160 : vector<8x8xf32>
      %162 = math.exp %161 : vector<8x8xf32>
      %c2_74 = arith.constant 2 : index
      %c0_75 = arith.constant 0 : index
      %c0_76 = arith.constant 0 : index
      %163 = vector.load %arg24[%c2_74, %c0_75, %c0_76] : memref<4x8x1xf32, #tpu.memory_space<vmem>>, vector<1x8x1xf32>
      %164 = vector.shape_cast %163 : vector<1x8x1xf32> to vector<8x1xf32>
      %165 = arith.mulf %159, %164 : vector<8x1xf32>
      %cst_77 = arith.constant dense<0.000000e+00> : vector<8xf32>
      %166 = vector.multi_reduction <add>, %162, %cst_77 [1] : vector<8x8xf32> to vector<8xf32>
      %167 = vector.shape_cast %166 : vector<8xf32> to vector<8x1xf32>
      %168 = arith.addf %165, %167 : vector<8x1xf32>
      %c2_78 = arith.constant 2 : index
      %c0_79 = arith.constant 0 : index
      %c0_80 = arith.constant 0 : index
      %169 = vector.load %arg24[%c2_78, %c0_79, %c0_80] : memref<4x8x1xf32, #tpu.memory_space<vmem>>, vector<1x8x1xf32>
      %170 = vector.shape_cast %169 : vector<1x8x1xf32> to vector<8x1xf32>
      %171 = vector.shape_cast %168 : vector<8x1xf32> to vector<1x8x1xf32>
      tpu.vector_store %arg24[%c2_78, %c0_79, %c0_80], %171 {strides = array<i32>} : memref<4x8x1xf32, #tpu.memory_space<vmem>>, vector<1x8x1xf32>,
      %c2_81 = arith.constant 2 : index
      %c0_82 = arith.constant 0 : index
      %c0_83 = arith.constant 0 : index
      %172 = vector.load %arg23[%c2_81, %c0_82, %c0_83] : memref<4x8x1xf32, #tpu.memory_space<vmem>>, vector<1x8x1xf32>
      %173 = vector.shape_cast %172 : vector<1x8x1xf32> to vector<8x1xf32>
      %174 = vector.shape_cast %157 : vector<8x1xf32> to vector<1x8x1xf32>
      tpu.vector_store %arg23[%c2_81, %c0_82, %c0_83], %174 {strides = array<i32>} : memref<4x8x1xf32, #tpu.memory_space<vmem>>, vector<1x8x1xf32>,
      %c0_84 = arith.constant 0 : index
      %c32 = arith.constant 32 : index
      %175 = vector.load %arg25[%c0_84, %c32] : memref<8x64xf32, #tpu.memory_space<vmem>>, vector<8x16xf32>
      %176 = vector.broadcast %159 : vector<8x1xf32> to vector<8x16xf32>
      %177 = arith.mulf %176, %175 : vector<8x16xf32>
      %178 = arith.truncf %162 : vector<8x8xf32> to vector<8x8xbf16>
      %cst_85 = arith.constant dense<0.000000e+00> : vector<8x16xf32>
      %179 = tpu.matmul %178, %148, %cst_85 {dimension_numbers = #tpu.dot_dimension_numbers<[1], [0], [0], [1], [0, 0, 1, 1], [], []>} : vector<8x8xbf16>, vector<8x16xbf16>, vector<8x16xf32> -> vector<8x16xf32>
      %180 = arith.addf %177, %179 : vector<8x16xf32>
      %c0_86 = arith.constant 0 : index
      %c32_87 = arith.constant 32 : index
      %181 = vector.load %arg25[%c0_86, %c32_87] : memref<8x64xf32, #tpu.memory_space<vmem>>, vector<8x16xf32>
      tpu.vector_store %arg25[%c0_86, %c32_87], %180 {strides = array<i32>} : memref<8x64xf32, #tpu.memory_space<vmem>>, vector<8x16xf32>,
      %182 = vector.extract_strided_slice %40 {offsets = [0, 48], sizes = [8, 16], strides = [1, 1]} : vector<8x128xf32> to vector<8x16xf32>
      %183 = vector.extract_strided_slice %182 {offsets = [0, 8], sizes = [8, 8], strides = [1, 1]} : vector<8x16xf32> to vector<8x8xf32>
      %184 = vector.extract_strided_slice %182 {offsets = [0, 0], sizes = [8, 8], strides = [1, 1]} : vector<8x16xf32> to vector<8x8xf32>
      %185 = tpu.concatenate %183, %184 in 1 : vector<8x8xf32>, vector<8x8xf32> -> vector<8x16xf32>
      %186 = arith.mulf %182, %41 : vector<8x16xf32>
      %187 = arith.mulf %185, %42 : vector<8x16xf32>
      %188 = arith.addf %186, %187 : vector<8x16xf32>
      %189 = arith.truncf %188 : vector<8x16xf32> to vector<8x16xbf16>
      %190 = vector.extract_strided_slice %40 {offsets = [0, 112], sizes = [8, 16], strides = [1, 1]} : vector<8x128xf32> to vector<8x16xf32>
      %191 = arith.truncf %190 : vector<8x16xf32> to vector<8x16xbf16>
      %c3 = arith.constant 3 : index
      %c0_88 = arith.constant 0 : index
      %c0_89 = arith.constant 0 : index
      %192 = vector.load %arg22[%c3, %c0_88, %c0_89] : memref<4x8x16xbf16, #tpu.memory_space<vmem>>, vector<1x8x16xbf16>
      %193 = vector.shape_cast %192 : vector<1x8x16xbf16> to vector<8x16xbf16>
      %cst_90 = arith.constant dense<0.000000e+00> : vector<8x8xf32>
      %194 = tpu.matmul %193, %189, %cst_90 {dimension_numbers = #tpu.dot_dimension_numbers<[1], [1], [0], [0], [0, 0, 1, 0], [], []>} : vector<8x16xbf16>, vector<8x16xbf16>, vector<8x8xf32> -> vector<8x8xf32>
      %195 = arith.addf %194, %52 : vector<8x8xf32>
      %c3_91 = arith.constant 3 : index
      %c0_92 = arith.constant 0 : index
      %c0_93 = arith.constant 0 : index
      %196 = vector.load %arg23[%c3_91, %c0_92, %c0_93] : memref<4x8x1xf32, #tpu.memory_space<vmem>>, vector<1x8x1xf32>
      %197 = vector.shape_cast %196 : vector<1x8x1xf32> to vector<8x1xf32>
      %cst_94 = arith.constant dense<0xFF800000> : vector<8xf32>
      %198 = vector.multi_reduction <maximumf>, %195, %cst_94 [1] : vector<8x8xf32> to vector<8xf32>
      %199 = vector.shape_cast %198 : vector<8xf32> to vector<8x1xf32>
      %200 = arith.maximumf %197, %199 : vector<8x1xf32>
      %201 = arith.subf %197, %200 : vector<8x1xf32>
      %202 = math.exp %201 : vector<8x1xf32>
      %203 = vector.broadcast %200 : vector<8x1xf32> to vector<8x8xf32>
      %204 = arith.subf %195, %203 : vector<8x8xf32>
      %205 = math.exp %204 : vector<8x8xf32>
      %c3_95 = arith.constant 3 : index
      %c0_96 = arith.constant 0 : index
      %c0_97 = arith.constant 0 : index
      %206 = vector.load %arg24[%c3_95, %c0_96, %c0_97] : memref<4x8x1xf32, #tpu.memory_space<vmem>>, vector<1x8x1xf32>
      %207 = vector.shape_cast %206 : vector<1x8x1xf32> to vector<8x1xf32>
      %208 = arith.mulf %202, %207 : vector<8x1xf32>
      %cst_98 = arith.constant dense<0.000000e+00> : vector<8xf32>
      %209 = vector.multi_reduction <add>, %205, %cst_98 [1] : vector<8x8xf32> to vector<8xf32>
      %210 = vector.shape_cast %209 : vector<8xf32> to vector<8x1xf32>
      %211 = arith.addf %208, %210 : vector<8x1xf32>
      %c3_99 = arith.constant 3 : index
      %c0_100 = arith.constant 0 : index
      %c0_101 = arith.constant 0 : index
      %212 = vector.load %arg24[%c3_99, %c0_100, %c0_101] : memref<4x8x1xf32, #tpu.memory_space<vmem>>, vector<1x8x1xf32>
      %213 = vector.shape_cast %212 : vector<1x8x1xf32> to vector<8x1xf32>
      %214 = vector.shape_cast %211 : vector<8x1xf32> to vector<1x8x1xf32>
      tpu.vector_store %arg24[%c3_99, %c0_100, %c0_101], %214 {strides = array<i32>} : memref<4x8x1xf32, #tpu.memory_space<vmem>>, vector<1x8x1xf32>,
      %c3_102 = arith.constant 3 : index
      %c0_103 = arith.constant 0 : index
      %c0_104 = arith.constant 0 : index
      %215 = vector.load %arg23[%c3_102, %c0_103, %c0_104] : memref<4x8x1xf32, #tpu.memory_space<vmem>>, vector<1x8x1xf32>
      %216 = vector.shape_cast %215 : vector<1x8x1xf32> to vector<8x1xf32>
      %217 = vector.shape_cast %200 : vector<8x1xf32> to vector<1x8x1xf32>
      tpu.vector_store %arg23[%c3_102, %c0_103, %c0_104], %217 {strides = array<i32>} : memref<4x8x1xf32, #tpu.memory_space<vmem>>, vector<1x8x1xf32>,
      %c0_105 = arith.constant 0 : index
      %c48 = arith.constant 48 : index
      %218 = vector.load %arg25[%c0_105, %c48] : memref<8x64xf32, #tpu.memory_space<vmem>>, vector<8x16xf32>
      %219 = vector.broadcast %202 : vector<8x1xf32> to vector<8x16xf32>
      %220 = arith.mulf %219, %218 : vector<8x16xf32>
      %221 = arith.truncf %205 : vector<8x8xf32> to vector<8x8xbf16>
      %cst_106 = arith.constant dense<0.000000e+00> : vector<8x16xf32>
      %222 = tpu.matmul %221, %191, %cst_106 {dimension_numbers = #tpu.dot_dimension_numbers<[1], [0], [0], [1], [0, 0, 1, 1], [], []>} : vector<8x8xbf16>, vector<8x16xbf16>, vector<8x16xf32> -> vector<8x16xf32>
      %223 = arith.addf %220, %222 : vector<8x16xf32>
      %c0_107 = arith.constant 0 : index
      %c48_108 = arith.constant 48 : index
      %224 = vector.load %arg25[%c0_107, %c48_108] : memref<8x64xf32, #tpu.memory_space<vmem>>, vector<8x16xf32>
      tpu.vector_store %arg25[%c0_107, %c48_108], %223 {strides = array<i32>} : memref<8x64xf32, #tpu.memory_space<vmem>>, vector<8x16xf32>,
    } else {
    }
    %c1_i32 = arith.constant 1 : i32
    %9 = arith.cmpi eq, %arg2, %c1_i32 : i32
    %10 = arith.extui %9 : i1 to i32
    %c0_i32_3 = arith.constant 0 : i32
    %11 = arith.cmpi ne, %10, %c0_i32_3 : i32
    scf.if %11 {
      %c0 = arith.constant 0 : index
      %c0_4 = arith.constant 0 : index
      %c0_5 = arith.constant 0 : index
      %12 = vector.load %arg3[%c0, %c0_4, %c0_5] : memref<1x8x64xf32, #tpu.memory_space<vmem>>, vector<1x8x64xf32>
      %13 = vector.shape_cast %12 : vector<1x8x64xf32> to vector<8x64xf32>
      %cst = arith.constant dense<0.000000e+00> : vector<8xf32>
      %14 = vector.multi_reduction <add>, %13, %cst [1] : vector<8x64xf32> to vector<8xf32>
      %15 = vector.shape_cast %14 : vector<8xf32> to vector<8x1xf32>
      %cst_6 = arith.constant 6.400000e+01 : f32
      %16 = vector.broadcast %cst_6 : f32 to vector<8x1xf32>
      %17 = arith.divf %15, %16 : vector<8x1xf32>
      %18 = vector.broadcast %17 : vector<8x1xf32> to vector<8x64xf32>
      %19 = arith.subf %13, %18 : vector<8x64xf32>
      %20 = arith.mulf %19, %19 : vector<8x64xf32>
      %cst_7 = arith.constant dense<0.000000e+00> : vector<8xf32>
      %21 = vector.multi_reduction <add>, %20, %cst_7 [1] : vector<8x64xf32> to vector<8xf32>
      %22 = vector.shape_cast %21 : vector<8xf32> to vector<8x1xf32>
      %cst_8 = arith.constant 6.400000e+01 : f32
      %23 = vector.broadcast %cst_8 : f32 to vector<8x1xf32>
      %24 = arith.divf %22, %23 : vector<8x1xf32>
      %25 = vector.broadcast %17 : vector<8x1xf32> to vector<8x64xf32>
      %26 = arith.subf %13, %25 : vector<8x64xf32>
      %cst_9 = arith.constant 9.99999974E-6 : f32
      %27 = vector.broadcast %cst_9 : f32 to vector<8x1xf32>
      %28 = arith.addf %24, %27 : vector<8x1xf32>
      %29 = math.rsqrt %28 : vector<8x1xf32>
      %30 = vector.broadcast %29 : vector<8x1xf32> to vector<8x64xf32>
      %31 = arith.mulf %26, %30 : vector<8x64xf32>
      %c0_10 = arith.constant 0 : index
      %c0_11 = arith.constant 0 : index
      %32 = vector.load %arg13[%c0_10, %c0_11] : memref<1x64xf32, #tpu.memory_space<vmem>>, vector<1x64xf32>
      %33 = vector.broadcast %32 : vector<1x64xf32> to vector<8x64xf32>
      %34 = arith.mulf %31, %33 : vector<8x64xf32>
      %c0_12 = arith.constant 0 : index
      %c0_13 = arith.constant 0 : index
      %35 = vector.load %arg14[%c0_12, %c0_13] : memref<1x64xf32, #tpu.memory_space<vmem>>, vector<1x64xf32>
      %36 = vector.broadcast %35 : vector<1x64xf32> to vector<8x64xf32>
      %37 = arith.addf %34, %36 : vector<8x64xf32>
      %c0_14 = arith.constant 0 : index
      %c0_15 = arith.constant 0 : index
      %38 = vector.load %arg25[%c0_14, %c0_15] : memref<8x64xf32, #tpu.memory_space<vmem>>, vector<8x16xf32>
      %c0_16 = arith.constant 0 : index
      %c0_17 = arith.constant 0 : index
      %c0_18 = arith.constant 0 : index
      %39 = vector.load %arg24[%c0_16, %c0_17, %c0_18] : memref<4x8x1xf32, #tpu.memory_space<vmem>>, vector<1x8x1xf32>
      %40 = vector.shape_cast %39 : vector<1x8x1xf32> to vector<8x1xf32>
      %41 = tpu.reciprocal %40 {approx = true} : vector<8x1xf32> -> vector<8x1xf32>
      %42 = vector.broadcast %41 : vector<8x1xf32> to vector<8x16xf32>
      %43 = arith.mulf %38, %42 : vector<8x16xf32>
      %c0_19 = arith.constant 0 : index
      %c0_20 = arith.constant 0 : index
      %44 = vector.load %arg25[%c0_19, %c0_20] : memref<8x64xf32, #tpu.memory_space<vmem>>, vector<8x16xf32>
      tpu.vector_store %arg25[%c0_19, %c0_20], %43 {strides = array<i32>} : memref<8x64xf32, #tpu.memory_space<vmem>>, vector<8x16xf32>,
      %c0_21 = arith.constant 0 : index
      %c16 = arith.constant 16 : index
      %45 = vector.load %arg25[%c0_21, %c16] : memref<8x64xf32, #tpu.memory_space<vmem>>, vector<8x16xf32>
      %c1 = arith.constant 1 : index
      %c0_22 = arith.constant 0 : index
      %c0_23 = arith.constant 0 : index
      %46 = vector.load %arg24[%c1, %c0_22, %c0_23] : memref<4x8x1xf32, #tpu.memory_space<vmem>>, vector<1x8x1xf32>
      %47 = vector.shape_cast %46 : vector<1x8x1xf32> to vector<8x1xf32>
      %48 = tpu.reciprocal %47 {approx = true} : vector<8x1xf32> -> vector<8x1xf32>
      %49 = vector.broadcast %48 : vector<8x1xf32> to vector<8x16xf32>
      %50 = arith.mulf %45, %49 : vector<8x16xf32>
      %c0_24 = arith.constant 0 : index
      %c16_25 = arith.constant 16 : index
      %51 = vector.load %arg25[%c0_24, %c16_25] : memref<8x64xf32, #tpu.memory_space<vmem>>, vector<8x16xf32>
      tpu.vector_store %arg25[%c0_24, %c16_25], %50 {strides = array<i32>} : memref<8x64xf32, #tpu.memory_space<vmem>>, vector<8x16xf32>,
      %c0_26 = arith.constant 0 : index
      %c32 = arith.constant 32 : index
      %52 = vector.load %arg25[%c0_26, %c32] : memref<8x64xf32, #tpu.memory_space<vmem>>, vector<8x16xf32>
      %c2 = arith.constant 2 : index
      %c0_27 = arith.constant 0 : index
      %c0_28 = arith.constant 0 : index
      %53 = vector.load %arg24[%c2, %c0_27, %c0_28] : memref<4x8x1xf32, #tpu.memory_space<vmem>>, vector<1x8x1xf32>
      %54 = vector.shape_cast %53 : vector<1x8x1xf32> to vector<8x1xf32>
      %55 = tpu.reciprocal %54 {approx = true} : vector<8x1xf32> -> vector<8x1xf32>
      %56 = vector.broadcast %55 : vector<8x1xf32> to vector<8x16xf32>
      %57 = arith.mulf %52, %56 : vector<8x16xf32>
      %c0_29 = arith.constant 0 : index
      %c32_30 = arith.constant 32 : index
      %58 = vector.load %arg25[%c0_29, %c32_30] : memref<8x64xf32, #tpu.memory_space<vmem>>, vector<8x16xf32>
      tpu.vector_store %arg25[%c0_29, %c32_30], %57 {strides = array<i32>} : memref<8x64xf32, #tpu.memory_space<vmem>>, vector<8x16xf32>,
      %c0_31 = arith.constant 0 : index
      %c48 = arith.constant 48 : index
      %59 = vector.load %arg25[%c0_31, %c48] : memref<8x64xf32, #tpu.memory_space<vmem>>, vector<8x16xf32>
      %c3 = arith.constant 3 : index
      %c0_32 = arith.constant 0 : index
      %c0_33 = arith.constant 0 : index
      %60 = vector.load %arg24[%c3, %c0_32, %c0_33] : memref<4x8x1xf32, #tpu.memory_space<vmem>>, vector<1x8x1xf32>
      %61 = vector.shape_cast %60 : vector<1x8x1xf32> to vector<8x1xf32>
      %62 = tpu.reciprocal %61 {approx = true} : vector<8x1xf32> -> vector<8x1xf32>
      %63 = vector.broadcast %62 : vector<8x1xf32> to vector<8x16xf32>
      %64 = arith.mulf %59, %63 : vector<8x16xf32>
      %c0_34 = arith.constant 0 : index
      %c48_35 = arith.constant 48 : index
      %65 = vector.load %arg25[%c0_34, %c48_35] : memref<8x64xf32, #tpu.memory_space<vmem>>, vector<8x16xf32>
      tpu.vector_store %arg25[%c0_34, %c48_35], %64 {strides = array<i32>} : memref<8x64xf32, #tpu.memory_space<vmem>>, vector<8x16xf32>,
      %c0_36 = arith.constant 0 : index
      %c0_37 = arith.constant 0 : index
      %66 = vector.load %arg25[%c0_36, %c0_37] : memref<8x64xf32, #tpu.memory_space<vmem>>, vector<8x64xf32>
      %67 = arith.truncf %66 : vector<8x64xf32> to vector<8x64xbf16>
      %c0_38 = arith.constant 0 : index
      %c0_39 = arith.constant 0 : index
      %68 = vector.load %arg11[%c0_38, %c0_39] : memref<64x64xbf16, #tpu.memory_space<vmem>>, vector<64x64xbf16>
      %cst_40 = arith.constant dense<0.000000e+00> : vector<8x64xf32>
      %69 = tpu.matmul %67, %68, %cst_40 {dimension_numbers = #tpu.dot_dimension_numbers<[1], [0], [0], [1], [0, 0, 1, 1], [], []>} : vector<8x64xbf16>, vector<64x64xbf16>, vector<8x64xf32> -> vector<8x64xf32>
      %c0_41 = arith.constant 0 : index
      %c0_42 = arith.constant 0 : index
      %70 = vector.load %arg12[%c0_41, %c0_42] : memref<1x64xf32, #tpu.memory_space<vmem>>, vector<1x64xf32>
      %71 = vector.broadcast %70 : vector<1x64xf32> to vector<8x64xf32>
      %72 = arith.addf %69, %71 : vector<8x64xf32>
      %73 = arith.addf %37, %72 : vector<8x64xf32>
      %cst_43 = arith.constant dense<0.000000e+00> : vector<8xf32>
      %74 = vector.multi_reduction <add>, %73, %cst_43 [1] : vector<8x64xf32> to vector<8xf32>
      %75 = vector.shape_cast %74 : vector<8xf32> to vector<8x1xf32>
      %cst_44 = arith.constant 6.400000e+01 : f32
      %76 = vector.broadcast %cst_44 : f32 to vector<8x1xf32>
      %77 = arith.divf %75, %76 : vector<8x1xf32>
      %78 = vector.broadcast %77 : vector<8x1xf32> to vector<8x64xf32>
      %79 = arith.subf %73, %78 : vector<8x64xf32>
      %80 = arith.mulf %79, %79 : vector<8x64xf32>
      %cst_45 = arith.constant dense<0.000000e+00> : vector<8xf32>
      %81 = vector.multi_reduction <add>, %80, %cst_45 [1] : vector<8x64xf32> to vector<8xf32>
      %82 = vector.shape_cast %81 : vector<8xf32> to vector<8x1xf32>
      %cst_46 = arith.constant 6.400000e+01 : f32
      %83 = vector.broadcast %cst_46 : f32 to vector<8x1xf32>
      %84 = arith.divf %82, %83 : vector<8x1xf32>
      %85 = vector.broadcast %77 : vector<8x1xf32> to vector<8x64xf32>
      %86 = arith.subf %73, %85 : vector<8x64xf32>
      %cst_47 = arith.constant 9.99999974E-6 : f32
      %87 = vector.broadcast %cst_47 : f32 to vector<8x1xf32>
      %88 = arith.addf %84, %87 : vector<8x1xf32>
      %89 = math.rsqrt %88 : vector<8x1xf32>
      %90 = vector.broadcast %89 : vector<8x1xf32> to vector<8x64xf32>
      %91 = arith.mulf %86, %90 : vector<8x64xf32>
      %c0_48 = arith.constant 0 : index
      %c0_49 = arith.constant 0 : index
      %92 = vector.load %arg15[%c0_48, %c0_49] : memref<1x64xf32, #tpu.memory_space<vmem>>, vector<1x64xf32>
      %93 = vector.broadcast %92 : vector<1x64xf32> to vector<8x64xf32>
      %94 = arith.mulf %91, %93 : vector<8x64xf32>
      %c0_50 = arith.constant 0 : index
      %c0_51 = arith.constant 0 : index
      %95 = vector.load %arg16[%c0_50, %c0_51] : memref<1x64xf32, #tpu.memory_space<vmem>>, vector<1x64xf32>
      %96 = vector.broadcast %95 : vector<1x64xf32> to vector<8x64xf32>
      %97 = arith.addf %94, %96 : vector<8x64xf32>
      %98 = arith.truncf %97 : vector<8x64xf32> to vector<8x64xbf16>
      %c0_52 = arith.constant 0 : index
      %c0_53 = arith.constant 0 : index
      %99 = vector.load %arg17[%c0_52, %c0_53] : memref<64x256xbf16, #tpu.memory_space<vmem>>, vector<64x256xbf16>
      %cst_54 = arith.constant dense<0.000000e+00> : vector<8x256xf32>
      %100 = tpu.matmul %98, %99, %cst_54 {dimension_numbers = #tpu.dot_dimension_numbers<[1], [0], [0], [1], [0, 0, 1, 1], [], []>} : vector<8x64xbf16>, vector<64x256xbf16>, vector<8x256xf32> -> vector<8x256xf32>
      %c0_55 = arith.constant 0 : index
      %c0_56 = arith.constant 0 : index
      %101 = vector.load %arg18[%c0_55, %c0_56] : memref<1x256xf32, #tpu.memory_space<vmem>>, vector<1x256xf32>
      %102 = vector.broadcast %101 : vector<1x256xf32> to vector<8x256xf32>
      %103 = arith.addf %100, %102 : vector<8x256xf32>
      %cst_57 = arith.constant 5.000000e-01 : f32
      %104 = vector.broadcast %cst_57 : f32 to vector<8x256xf32>
      %105 = arith.mulf %104, %103 : vector<8x256xf32>
      %cst_58 = arith.constant 4.471500e-02 : f32
      %106 = vector.broadcast %cst_58 : f32 to vector<8x256xf32>
      %107 = arith.mulf %106, %103 : vector<8x256xf32>
      %108 = arith.mulf %107, %103 : vector<8x256xf32>
      %109 = arith.mulf %108, %103 : vector<8x256xf32>
      %110 = arith.addf %103, %109 : vector<8x256xf32>
      %cst_59 = arith.constant 0.797884583 : f32
      %111 = vector.broadcast %cst_59 : f32 to vector<8x256xf32>
      %112 = arith.mulf %111, %110 : vector<8x256xf32>
      %113 = math.tanh %112 : vector<8x256xf32>
      %cst_60 = arith.constant 1.000000e+00 : f32
      %114 = vector.broadcast %cst_60 : f32 to vector<8x256xf32>
      %115 = arith.addf %114, %113 : vector<8x256xf32>
      %116 = arith.mulf %105, %115 : vector<8x256xf32>
      %117 = arith.truncf %116 : vector<8x256xf32> to vector<8x256xbf16>
      %c0_61 = arith.constant 0 : index
      %c0_62 = arith.constant 0 : index
      %118 = vector.load %arg19[%c0_61, %c0_62] : memref<256x64xbf16, #tpu.memory_space<vmem>>, vector<256x64xbf16>
      %cst_63 = arith.constant dense<0.000000e+00> : vector<8x64xf32>
      %119 = tpu.matmul %117, %118, %cst_63 {dimension_numbers = #tpu.dot_dimension_numbers<[1], [0], [0], [1], [0, 0, 1, 1], [], []>} : vector<8x256xbf16>, vector<256x64xbf16>, vector<8x64xf32> -> vector<8x64xf32>
      %c0_64 = arith.constant 0 : index
      %c0_65 = arith.constant 0 : index
      %120 = vector.load %arg20[%c0_64, %c0_65] : memref<1x64xf32, #tpu.memory_space<vmem>>, vector<1x64xf32>
      %121 = vector.broadcast %120 : vector<1x64xf32> to vector<8x64xf32>
      %122 = arith.addf %119, %121 : vector<8x64xf32>
      %123 = arith.addf %97, %122 : vector<8x64xf32>
      %c0_66 = arith.constant 0 : index
      %c0_67 = arith.constant 0 : index
      %c0_68 = arith.constant 0 : index
      %124 = vector.load %arg21[%c0_66, %c0_67, %c0_68] : memref<1x8x64xf32, #tpu.memory_space<vmem>>, vector<1x8x64xf32>
      %125 = vector.shape_cast %124 : vector<1x8x64xf32> to vector<8x64xf32>
      %126 = vector.shape_cast %123 : vector<8x64xf32> to vector<1x8x64xf32>
      tpu.vector_store %arg21[%c0_66, %c0_67, %c0_68], %126 {strides = array<i32>} : memref<1x8x64xf32, #tpu.memory_space<vmem>>, vector<1x8x64xf32>,
    } else {
    }
    return
  }
  func.func @transform_0(%arg0: i32, %arg1: i32, %arg2: i32) -> (i32, i32, i32) {
    %c0_i32 = arith.constant 0 : i32
    %c0_i32_0 = arith.constant 0 : i32
    return %arg0, %arg1, %c0_i32 : i32, i32, i32
  }
  func.func @transform_1(%arg0: i32, %arg1: i32, %arg2: i32) -> (i32, i32, i32) {
    %c0_i32 = arith.constant 0 : i32
    %c0_i32_0 = arith.constant 0 : i32
    return %arg0, %arg2, %c0_i32 : i32, i32, i32
  }
  func.func @transform_2(%arg0: i32, %arg1: i32, %arg2: i32) -> (i32, i32) {
    %c0_i32 = arith.constant 0 : i32
    %c0_i32_0 = arith.constant 0 : i32
    return %arg1, %c0_i32 : i32, i32
  }
  func.func @transform_3(%arg0: i32, %arg1: i32, %arg2: i32) -> (i32, i32) {
    %c0_i32 = arith.constant 0 : i32
    %c0_i32_0 = arith.constant 0 : i32
    return %arg1, %c0_i32 : i32, i32
  }
  func.func @transform_4(%arg0: i32, %arg1: i32, %arg2: i32) -> (i32, i32) {
    %c0_i32 = arith.constant 0 : i32
    %c0_i32_0 = arith.constant 0 : i32
    return %arg2, %c0_i32 : i32, i32
  }
  func.func @transform_5(%arg0: i32, %arg1: i32, %arg2: i32) -> (i32, i32) {
    %c0_i32 = arith.constant 0 : i32
    %c0_i32_0 = arith.constant 0 : i32
    return %arg2, %c0_i32 : i32, i32
  }
  func.func @transform_6(%arg0: i32, %arg1: i32, %arg2: i32) -> (i32, i32) {
    %c0_i32 = arith.constant 0 : i32
    %c0_i32_0 = arith.constant 0 : i32
    %c0_i32_1 = arith.constant 0 : i32
    return %c0_i32, %c0_i32_0 : i32, i32
  }
  func.func @transform_7(%arg0: i32, %arg1: i32, %arg2: i32) -> (i32, i32) {
    %c0_i32 = arith.constant 0 : i32
    %c0_i32_0 = arith.constant 0 : i32
    %c0_i32_1 = arith.constant 0 : i32
    return %c0_i32, %c0_i32_0 : i32, i32
  }
  func.func @transform_8(%arg0: i32, %arg1: i32, %arg2: i32) -> (i32, i32) {
    %c0_i32 = arith.constant 0 : i32
    %c0_i32_0 = arith.constant 0 : i32
    %c0_i32_1 = arith.constant 0 : i32
    return %c0_i32, %c0_i32_0 : i32, i32
  }
  func.func @transform_9(%arg0: i32, %arg1: i32, %arg2: i32) -> (i32, i32) {
    %c0_i32 = arith.constant 0 : i32
    %c0_i32_0 = arith.constant 0 : i32
    %c0_i32_1 = arith.constant 0 : i32
    return %c0_i32, %c0_i32_0 : i32, i32
  }
  func.func @transform_10(%arg0: i32, %arg1: i32, %arg2: i32) -> (i32, i32) {
    %c0_i32 = arith.constant 0 : i32
    %c0_i32_0 = arith.constant 0 : i32
    %c0_i32_1 = arith.constant 0 : i32
    return %c0_i32, %c0_i32_0 : i32, i32
  }
  func.func @transform_11(%arg0: i32, %arg1: i32, %arg2: i32) -> (i32, i32) {
    %c0_i32 = arith.constant 0 : i32
    %c0_i32_0 = arith.constant 0 : i32
    %c0_i32_1 = arith.constant 0 : i32
    return %c0_i32, %c0_i32_0 : i32, i32
  }
  func.func @transform_12(%arg0: i32, %arg1: i32, %arg2: i32) -> (i32, i32) {
    %c0_i32 = arith.constant 0 : i32
    %c0_i32_0 = arith.constant 0 : i32
    %c0_i32_1 = arith.constant 0 : i32
    return %c0_i32, %c0_i32_0 : i32, i32
  }
  func.func @transform_13(%arg0: i32, %arg1: i32, %arg2: i32) -> (i32, i32) {
    %c0_i32 = arith.constant 0 : i32
    %c0_i32_0 = arith.constant 0 : i32
    %c0_i32_1 = arith.constant 0 : i32
    return %c0_i32, %c0_i32_0 : i32, i32
  }
  func.func @transform_14(%arg0: i32, %arg1: i32, %arg2: i32) -> (i32, i32) {
    %c0_i32 = arith.constant 0 : i32
    %c0_i32_0 = arith.constant 0 : i32
    %c0_i32_1 = arith.constant 0 : i32
    return %c0_i32, %c0_i32_0 : i32, i32
  }
  func.func @transform_15(%arg0: i32, %arg1: i32, %arg2: i32) -> (i32, i32) {
    %c0_i32 = arith.constant 0 : i32
    %c0_i32_0 = arith.constant 0 : i32
    %c0_i32_1 = arith.constant 0 : i32
    return %c0_i32, %c0_i32_0 : i32, i32
  }
  func.func @transform_16(%arg0: i32, %arg1: i32, %arg2: i32) -> (i32, i32) {
    %c0_i32 = arith.constant 0 : i32
    %c0_i32_0 = arith.constant 0 : i32
    %c0_i32_1 = arith.constant 0 : i32
    return %c0_i32, %c0_i32_0 : i32, i32
  }
  func.func @transform_17(%arg0: i32, %arg1: i32, %arg2: i32) -> (i32, i32) {
    %c0_i32 = arith.constant 0 : i32
    %c0_i32_0 = arith.constant 0 : i32
    %c0_i32_1 = arith.constant 0 : i32
    return %c0_i32, %c0_i32_0 : i32, i32
  }
  func.func @transform_18(%arg0: i32, %arg1: i32, %arg2: i32) -> (i32, i32, i32) {
    %c0_i32 = arith.constant 0 : i32
    %c0_i32_0 = arith.constant 0 : i32
    return %arg0, %arg1, %c0_i32 : i32, i32, i32
  }
}

</mosaic_0001>

<bundles_post_ra>
// kernel: tpu_custom_call.1
= control target key start
LH: loop header
LB: loop body
LE: loop exit
PB: predicated region body
PF: predicated region fallthrough
CT: control target
= control target key end

     0   :  { %s4107_s0 = inlined_call_operand.vmem [shape: f32[2,16,64], index: 0, kind: input, shape index: {}]   ;;  %s4108_s1 = inlined_call_operand.vmem [shape: f32[2,16,64], index: 1, kind: input, shape index: {}]   ;;  %s4109_s2 = inlined_call_operand.hbm [shape: f32[16,16], index: 2, kind: input, shape index: {}]   ;;  %s4110_s3 = inlined_call_operand.hbm [shape: f32[16,16], index: 3, kind: input, shape index: {}]   ;;  %s4111_s4 = inlined_call_operand.hbm [shape: f32[16,16], index: 4, kind: input, shape index: {}]   ;;  %s4112_s5 = inlined_call_operand.hbm [shape: f32[16,16], index: 5, kind: input, shape index: {}]   ;;  %s4113_s6 = inlined_call_operand.vmem [shape: bf16[64,64], index: 6, kind: input, shape index: {}]   ;;  %s4114_s7 = inlined_call_operand.vmem [shape: bf16[64,128], index: 7, kind: input, shape index: {}]   ;;  %s4115_s8 = inlined_call_operand.hbm [shape: bf16[64,64], index: 8, kind: input, shape index: {}]   ;;  %s4116_s9 = inlined_call_operand.vmem [shape: f32[1,64], index: 9, kind: input, shape index: {}]   ;;  %s4117_s10 = inlined_call_operand.vmem [shape: f32[1,64], index: 10, kind: input, shape index: {}]   ;;  %s4118_s11 = inlined_call_operand.vmem [shape: f32[1,64], index: 11, kind: input, shape index: {}]   ;;  %s4119_s12 = inlined_call_operand.vmem [shape: f32[1,64], index: 12, kind: input, shape index: {}]   ;;  %s4120_s13 = inlined_call_operand.vmem [shape: f32[1,64], index: 13, kind: input, shape index: {}]   ;;  %s4121_s14 = inlined_call_operand.vmem [shape: bf16[64,256], index: 14, kind: input, shape index: {}]   ;;  %s4122_s15 = inlined_call_operand.vmem [shape: f32[1,256], index: 15, kind: input, shape index: {}]   ;;  %s4123_s16 = inlined_call_operand.vmem [shape: bf16[256,64], index: 16, kind: input, shape index: {}]   ;;  %s4124_s17 = inlined_call_operand.vmem [shape: f32[1,64], index: 17, kind: input, shape index: {}]   ;;  %s4125_s18 = inlined_call_operand.hbm [shape: f32[2,16,64], index: 18, kind: output, shape index: {}]  }
   0x1   :  { %4155 = sst [smem:[#allocation39_spill]] %s4107_s0 }
   0x2   :  { %4156 = sst [smem:[#allocation40_spill]] %s4108_s1 }
   0x3   :  { %4157 = sst [smem:[#allocation41_spill]] %s4109_s2 }
   0x4   :  { %4158 = sst [smem:[#allocation42_spill]] %s4110_s3 }
   0x5   :  { %4159 = sst [smem:[#allocation43_spill]] %s4111_s4 }
   0x6   :  { %4160 = sst [smem:[#allocation44_spill]] %s4112_s5 }
   0x7   :  { %4161 = sst [smem:[#allocation45_spill]] %s4113_s6 }
   0x8   :  { %4162 = sst [smem:[#allocation46_spill]] %s4114_s7 }
   0x9   :  { %4163 = sst [smem:[#allocation47_spill]] %s4115_s8 }
   0xa   :  { %4164 = sst [smem:[#allocation48_spill]] %s4116_s9 }
   0xb   :  { %4165 = sst [smem:[#allocation49_spill]] %s4117_s10 }
   0xc   :  { %4166 = sst [smem:[#allocation50_spill]] %s4118_s11 }
   0xd   :  { %4167 = sst [smem:[#allocation51_spill]] %s4119_s12 }
   0xe   :  { %4168 = sst [smem:[#allocation52_spill]] %s4120_s13 }
   0xf   :  { %4169 = sst [smem:[#allocation53_spill]] %s4121_s14 }
  0x10   :  { %4170 = sst [smem:[#allocation54_spill]] %s4122_s15 }
  0x11   :  { %4171 = sst [smem:[#allocation55_spill]] %s4123_s16 }
  0x12   :  { %4172 = sst [smem:[#allocation56_spill]] %s4124_s17 }
  0x13   :  { %4173 = sst [smem:[#allocation57_spill]] %s4125_s18 }
  0x14   :  { %23 = vsyncpa [#allocation7], 0 }
  0x15   :  { %25 = vsyncpa [#allocation7 + $0x1], 0 }
  0x16   :  { %26 = vsyncpa [#allocation10], 0 }
  0x17   :  { %28 = vsyncpa [#allocation10 + $0x1], 0 }
  0x18   :  { %29 = vsyncpa [#allocation13], 0 }
  0x19   :  { %31 = vsyncpa [#allocation13 + $0x1], 0 }
  0x1a   :  { %32 = vsyncpa [#allocation8], 0 }
  0x1b   :  { %34 = vsyncpa [#allocation8 + $0x1], 0  ;;  %s3431_s27 = smov 0   ;;  %s3433_s28 = smov 0  }
  0x1c   :  { %s3435_s29 = smov 0   ;;  %s3437_s30 = smov 0  }
  0x1d   :  { %s3439_s0 = smov 0   ;;  %s3441_s19 = smov 0  }
  0x1e   :  { %s3443_s1 = smov 0   ;;  %s3445_s20 = smov 0  }
  0x1f   :  { %s3447_s21 = smov 0   ;;  %s3449_s22 = smov 0  }
  0x20   :  { %s3451_s2 = smov 0   ;;  %s3453_s23 = smov 0  }
  0x21   :  { %s3455_s24 = smov 0   ;;  %s3457_s25 = smov 0  }
  0x22   :  { %s3459_s26 = smov 0   ;;  %s3461_s18 = smov 0  }
  0x23 LB: > { %4174 = sst [smem:[#allocation22_spill]] %s3233_s27  ;;  %s3510_s17 = sadd.s32 4294967295, %s3293_s18   ;;  %s3293_s18 = sphi %s3461_s18, %s40_s18   ;;  %s3289_s26 = sphi %s3459_s26, %s4262_s26   ;;  %s3285_s25 = sphi %s3457_s25, %s4261_s25   ;;  %s3281_s24 = sphi %s3455_s24, %s4272_s24   ;;  %s3277_s23 = sphi %s3453_s23, %s4259_s23   ;;  %s3273_s2 = sphi %s3451_s2, %s4271_s2   ;;  %s3269_s22 = sphi %s3449_s22, %s4257_s22   ;;  %s3265_s21 = sphi %s3447_s21, %s4270_s21   ;;  %s3261_s20 = sphi %s3445_s20, %s4269_s20   ;;  %s3257_s1 = sphi %s3443_s1, %s4268_s1   ;;  %s3253_s19 = sphi %s3441_s19, %s4267_s19   ;;  %s3249_s0 = sphi %s3439_s0, %s4266_s0   ;;  %s3245_s30 = sphi %s3437_s30, %s4255_s30   ;;  %s3241_s29 = sphi %s3435_s29, %s4265_s29   ;;  %s3237_s28 = sphi %s3433_s28, %s4264_s28   ;;  %s3233_s27 = sphi %s3431_s27, %s4254_s27  }
  0x24   : > { %4175 = sst [smem:[#allocation23_spill]] %s3237_s28  ;;  %s2462_s15 = sadd.s32 4294967294, %s3293_s18  }
  0x25   : > { %4176 = sst [smem:[#allocation24_spill]] %s3249_s0  ;;  %p136_p0 = scmp.eq.s32.totalorder %s3510_s17, 0 }
  0x26   : > { %4177 = sst [smem:[#allocation25_spill]] %s3269_s22  ;;  %p187_p1 = scmp.ne.s32.totalorder %s3249_s0, %s3245_s30 }
  0x27   : > { %4178 = sst [smem:[#allocation26_spill]] %s3273_s2  ;;  %p490_p2 = scmp.ne.s32.totalorder %s3241_s29, %s3237_s28 }
  0x28   : > { %4179 = sst [smem:[#allocation27_spill]] %s3277_s23  ;;  %p3520_p3 = por %p187_p1, %p136_p0 }
  0x29   : > { %4180 = sst [smem:[#allocation28_spill]] %s3281_s24  ;;  %p491_p4 = scmp.eq.s32.totalorder %s3510_s17, 7 }
  0x2a   : > { %4181 = sst [smem:[#allocation29_spill]] %s3285_s25  ;;  %p496_p5 = scmp.ne.s32.totalorder %s3237_s28, %s3233_s27 }
  0x2b   : > { %4182 = sst [smem:[#allocation30_spill]] %s3289_s26  ;;  %p497_p6 = scmp.eq.s32.totalorder %s2462_s15, 7 }
  0x2c   : > { %4183 = sst [smem:[#allocation31_spill]] %s3510_s17  ;;  %p3527_p7 = por %p491_p4, %p490_p2 }
  0x2d   : > { %s4184_s13 = scalar_select %p3520_p3, 1, 0 }
  0x2e   : > { %s4186_s12 = scalar_select %p3527_p7, 1, 0 }
  0x2f   : > { %4185 = sst [smem:[#allocation32_spill]] %s4184_s13  ;;  %p2463_p8 = scmp.ge.s32.totalorder %s3293_s18, 1 }
  0x30   : > { %4187 = sst [smem:[#allocation33_spill]] %s4186_s12  ;;  %p3532_p9 = por %p497_p6, %p496_p5 }
  0x31   : > { %p504_p10 = scmp.lt.s32.totalorder %s3293_s18, 9  ;;  %s3295_s16 = smov [#allocation14]  }
  0x32   : > { %s4188_s14 = scalar_select %p3532_p9, 1, 0 }
  0x33   : > { %p3537_p11 = pnand %p2463_p8, %p504_p10  ;;  %s522_s9 = sshll.u32 %s3295_s16, 4  ;;  %s523_s9 = int_to_ptr.vmem [resolvable:$true] %s522_s9 }
  0x34   : > { %4189 = sst [smem:[#allocation34_spill]] %s4188_s14  ;;  %s2990_s15 = scalar_lea.vmem %s523_s9, 512 }
  0x35   : > { %p2710_p12 = pneg %p3537_p11  ;;  %p2991_p2 = scmp.ne.s32.totalorder %s523_s9, %s2990_s15 }
  0x36   : > { %p2998_p6 = scmp.lt.s32.totalorder %s523_s9, %s523_s9  ;;  %p2999_p9 = scmp.lt.s32.totalorder %s2990_s15, %s2990_s15 }
  0x37   : > { %p2711_p13 = pnand %p2710_p12, %p136_p0 }
  0x38   : > { %p3000_p7 = por %p2999_p9, %p2998_p6 }
  0x39   : > { %p2981_p1 = pneg %p2711_p13 }
  0x3b   : > { %p2993_p4 = pnand %p2991_p2, %p2981_p1 }
  0x3d   : > { %p2994_p5 = pneg %p2993_p4 }
  0x3f   : > { %p3001_p8 = pnand %p3000_p7, %p2994_p5 }
  0x41   : > { %3004 = shalt.err (!%p3001_p8)
}
  0x42   : > { %s3296_s14 = smov 64   ;;  %s3297_s16 = smov 4  }
  0x43   : > { %s4191_s8 = sld [smem:[#allocation47_spill]]  ;;  %p129_p7 = scmp.ne.s32.totalorder %s3265_s21, %s3261_s20 }
  0x44   : > { %p130_p9 = scmp.eq.s32.totalorder %s3293_s18, 0  ;;  %p135_p10 = scmp.ne.s32.totalorder %s3261_s20, %s3257_s1 }
  0x45   : > { %p181_p12 = scmp.ne.s32.totalorder %s3253_s19, %s3249_s0  ;;  %p2732_p1 = scmp.lt.s32.totalorder %s3293_s18, 8 }
  0x46   : > { %p131_p2 = por %p130_p9, %p129_p7  ;;  %p3560_p4 = por %p136_p0, %p135_p10 }
  0x47   : > { %p183_p5 = por %p181_p12, %p130_p9  ;;  %s4136_s10 = sand.u32 1, %s3265_s21  }
  0x48   : > { %s2466_s27 = sshll.u32 %s4136_s10, 3  ;;  %s2467_s15 = sshll.u32 %s3285_s25, 7 }
  0x49   : > { %2713 = dma.hbm_to_vmem [thread:$0]  (!%p2711_p13), %s4191_s8, 512, %s523_s9, [#allocation13], %s3296_s14, %s3296_s14, %s3297_s16  }
  0x4a   : > { %p3568_p13 = pnand %p2732_p1, %p131_p2  ;;  %s4138_s14 = sand.u32 1, %s3293_s18  }
  0x4b   : > { %s4194_s3 = sld [smem:[#allocation42_spill]]  ;;  %s607_s12 = scalar_lea.vmem [#allocation9], %s2466_s27 }
  0x4c   : > { %s614_s8 = sshll.u32 %s607_s12, 4  ;;  %p3576_p6 = pnand %p2732_p1, %p183_p5  ;;  %s615_s8 = int_to_ptr.vmem [resolvable:$true] %s614_s8 }
  0x4d   : > { %s3582_s10 = scalar_lea.sflag [#allocation10], %s4138_s14  ;;  %p3007_p8 = pneg %p3568_p13 }
  0x4e   : > { %s3018_s22 = scalar_lea.vmem %s615_s8, 128  ;;  %s3298_s1 = smov [#allocation9]  }
  0x4f   : > { %p3019_p7 = scmp.ne.s32.totalorder %s615_s8, %s3018_s22  ;;  %s3023_s16 = sshll.u32 %s3298_s1, 4  ;;  %s3024_s16 = int_to_ptr.vmem [resolvable:$false] %s3023_s16 }
  0x50   : > { %s3025_s12 = scalar_lea.vmem %s3024_s16, 256  ;;  %p3026_p12 = scmp.lt.s32.totalorder %s615_s8, %s3024_s16 }
  0x51   : > { %s612_s7 = scalar_lea.hbm %s4194_s3, %s2467_s15  ;;  %p3021_p9 = pnand %p3019_p7, %p3007_p8 }
  0x52   : > { %p3027_p1 = scmp.lt.s32.totalorder %s3025_s12, %s3018_s22 }
  0x53   : > { %p3022_p10 = pneg %p3021_p9 }
  0x54   : > { %p3028_p2 = por %p3027_p1, %p3026_p12 }
  0x56   : > { %p3029_p5 = pnand %p3028_p2, %p3022_p10 }
  0x58   : > { %3032 = shalt.err (!%p3029_p5)
}
  0x59   : > { %2720 = dma.hbm_to_vmem [thread:$0]  (!%p3568_p13), %s612_s7, 128, %s615_s8, %s3582_s10  }
  0x5a   : > { %s4196_s2 = sld [smem:[#allocation41_spill]]  ;;  %s589_s28 = scalar_lea.vmem [#allocation6], %s2466_s27 }
  0x5b   : > { %s596_s13 = sshll.u32 %s589_s28, 4  ;;  %s4197_s1 = sand.u32 1, %s3265_s21   ;;  %s597_s13 = int_to_ptr.vmem [resolvable:$true] %s596_s13 }
  0x5c   : > { %s586_s0 = scalar_lea.sflag [#allocation7], %s4197_s1  ;;  %s3046_s16 = scalar_lea.vmem %s597_s13, 128 }
  0x5d   : > { %p3047_p7 = scmp.ne.s32.totalorder %s597_s13, %s3046_s16  ;;  %s3299_s22 = smov [#allocation6]  }
  0x5e   : > { %s3051_s12 = sshll.u32 %s3299_s22, 4  ;;  %s3052_s12 = int_to_ptr.vmem [resolvable:$false] %s3051_s12 }
  0x5f   : > { %p3049_p9 = pnand %p3047_p7, %p3007_p8  ;;  %s3053_s17 = scalar_lea.vmem %s3052_s12, 256 }
  0x60   : > { %s594_s23 = scalar_lea.hbm %s4196_s2, %s2467_s15  ;;  %p3054_p12 = scmp.lt.s32.totalorder %s597_s13, %s3052_s12 }
  0x61   : > { %p3050_p10 = pneg %p3049_p9  ;;  %p3055_p1 = scmp.lt.s32.totalorder %s3053_s17, %s3046_s16 }
  0x63   : > { %p3056_p2 = por %p3055_p1, %p3054_p12 }
  0x65   : > { %p3057_p5 = pnand %p3056_p2, %p3050_p10 }
  0x67   : > { %3060 = shalt.err (!%p3057_p5)
}
  0x68   : > { %2717 = dma.hbm_to_vmem [thread:$0]  (!%p3568_p13), %s594_s23, 128, %s597_s13, %s586_s0  }
  0x69   : > { %s52_s3 = sadd.s32 1, %s3281_s24  ;;  %s59_s7 = sadd.s32 1, %s3289_s26 }
  0x6a   : > { %p53_p8 = scmp.ge.s32.totalorder %s52_s3, 2  ;;  %s174_s8 = sadd.s32 1, %s3253_s19 }
  0x6b   : > { %s623_s17 = sand.u32 1, %s3253_s19   ;;  %s2471_s28 = sshll.u32 %s3281_s24, 7 }
  0x6c   : > { %s4274_s3 = smov (%p53_p8, %s52_s3), 0  ;;  %s4199_s2 = sadd.s32 1, %s3285_s25 }
  0x6d   : > { %4198 = sst [smem:[#allocation35_spill]] %s4274_s3  ;;  %s4276_s2 = smov (!%p53_p8, %s4199_s2), %s3285_s25 }
  0x6e   : > { %s171_s27 = ssub.s32 %s3281_s24, %s4274_s3  ;;  %s3614_s15 = sshll.u32 %s623_s17, 3 }
  0x6f   : > { %p57_p13 = scmp.ge.s32.totalorder %s4276_s2, 2  ;;  %p172_p7 = scmp.eq.s32.totalorder %s171_s27, 0 }
  0x70   : > { %s4200_s4 = sld [smem:[#allocation43_spill]]  ;;  %s625_s14 = scalar_lea.vmem [#allocation11], %s3614_s15 }
  0x71   : > { %s4278_s2 = smov (%p57_p13, %s4276_s2), 0  ;;  %s4280_s7 = smov (!%p57_p13, %s59_s7), %s3289_s26 }
  0x72   : > { %4201 = sst [smem:[#allocation36_spill]] %s4278_s2  ;;  %s119_s9 = ssub.s32 %s3285_s25, %s4278_s2 }
  0x73   : > { %s632_s1 = sshll.u32 %s625_s14, 4  ;;  %p61_p9 = scmp.ge.s32.totalorder %s4280_s7, 2  ;;  %s633_s1 = int_to_ptr.vmem [resolvable:$true] %s632_s1 }
  0x74   : > { %p120_p10 = scmp.eq.s32.totalorder %s119_s9, 0  ;;  %s4203_s22 = sadd.s32 1, %s3265_s21 }
  0x75   : > { %s3628_s16 = scalar_select %p172_p7, %s3253_s19, %s174_s8  }
  0x76   : > { %s3619_s23 = scalar_lea.hbm %s4200_s4, %s2471_s28  ;;  %s4282_s7 = smov (%p61_p9, %s4280_s7), 0 }
  0x77   : > { %4202 = sst [smem:[#allocation37_spill]] %s4282_s7  ;;  %s475_s17 = ssub.s32 %s3289_s26, %s4282_s7 }
  0x78   : > { %s3635_s12 = scalar_select %p120_p10, %s3265_s21, %s4203_s22  }
  0x79   : > { %s477_s27 = sor.u32 %s475_s17, %s119_s9  ;;  %s4205_s5 = sld [smem:[#allocation44_spill]] }
  0x7a   : > { %4204 = sst [smem:[#allocation38_spill]] %s3635_s12  ;;  %p478_p12 = scmp.eq.s32.totalorder %s477_s27, 0 }
  0x7b   : > { %p3063_p1 = pneg %p3576_p6  ;;  %s3074_s14 = scalar_lea.vmem %s633_s1, 128 }
  0x7c   : > { %p3075_p2 = scmp.ne.s32.totalorder %s633_s1, %s3074_s14  ;;  %s3300_s8 = smov [#allocation11]  }
  0x7d   : > { %s3079_s22 = sshll.u32 %s3300_s8, 4  ;;  %s3080_s22 = int_to_ptr.vmem [resolvable:$false] %s3079_s22 }
  0x7e   : > { %p3077_p5 = pnand %p3075_p2, %p3063_p1  ;;  %s3081_s7 = scalar_lea.vmem %s3080_s22, 256 }
  0x7f   : > { %s3642_s4 = scalar_lea.hbm %s4205_s5, %s2471_s28  ;;  %p3082_p13 = scmp.lt.s32.totalorder %s633_s1, %s3080_s22 }
  0x80   : > { %p3078_p8 = pneg %p3077_p5  ;;  %p3083_p7 = scmp.lt.s32.totalorder %s3081_s7, %s3074_s14 }
  0x82   : > { %p3084_p9 = por %p3083_p7, %p3082_p13 }
  0x84   : > { %p3085_p10 = pnand %p3084_p9, %p3078_p8 }
  0x86   : > { %3088 = shalt.err (!%p3085_p10)
}
  0x87   : > { %2723 = dma.hbm_to_vmem [thread:$0]  (!%p3576_p6), %s3619_s23, 128, %s633_s1, %s3582_s10  }
  0x88   : > { %s4206_s28 = sadd.s32 1, %s3241_s29  ;;  %s643_s17 = scalar_lea.vmem [#allocation12], %s3614_s15 }
  0x89   : > { %s3657_s9 = scalar_select %p478_p12, %s3241_s29, %s4206_s28  }
  0x8a   : > { %s650_s13 = sshll.u32 %s643_s17, 4  ;;  %s4207_s7 = sand.u32 1, %s3293_s18   ;;  %s651_s13 = int_to_ptr.vmem [resolvable:$true] %s650_s13 }
  0x8b   : > { %s640_s0 = scalar_lea.sflag [#allocation13], %s4207_s7  ;;  %s3102_s14 = scalar_lea.vmem %s651_s13, 128 }
  0x8c   : > { %p3103_p2 = scmp.ne.s32.totalorder %s651_s13, %s3102_s14  ;;  %s3301_s8 = smov [#allocation12]  }
  0x8d   : > { %s3107_s22 = sshll.u32 %s3301_s8, 4  ;;  %s3108_s22 = int_to_ptr.vmem [resolvable:$false] %s3107_s22 }
  0x8e   : > { %p3105_p5 = pnand %p3103_p2, %p3063_p1  ;;  %s3109_s5 = scalar_lea.vmem %s3108_s22, 256 }
  0x8f   : > { %p3110_p13 = scmp.lt.s32.totalorder %s651_s13, %s3108_s22  ;;  %p3111_p7 = scmp.lt.s32.totalorder %s3109_s5, %s3102_s14 }
  0x90   : > { %p3106_p8 = pneg %p3105_p5 }
  0x91   : > { %p3112_p9 = por %p3111_p7, %p3110_p13 }
  0x93   : > { %p3113_p12 = pnand %p3112_p9, %p3106_p8 }
  0x95   : > { %3116 = shalt.err (!%p3113_p12)
}
  0x96   : > { %2726 = dma.hbm_to_vmem [thread:$0]  (!%p3576_p6), %s3642_s4, 128, %s651_s13, %s640_s0  }
  0x97   : > { %659 = sbr.rel (%p3537_p11) target bundleno = 3967 (0xf7f), region = 92  ;;  %s661_s10 = sand.u32 (!%p3537_p11), 1, %s3261_s20  }
  0x98   : > { %s3671_s15 = sshll.u32 (!%p3537_p11), %s661_s10, 3  ;;  %s662_s23 = scalar_lea.sflag (!%p3537_p11), [#allocation7], %s661_s10 }
  0x9c   : > { %3208 = dma.done.wait (%p3560_p4), %s662_s23, 128  }
  0x9d   : > { %3210 = vsyncadd (%p3560_p4), %s662_s23, 4294967168  ;;  %s4208_s5 = sld [smem:[#allocation31_spill]] }
  0xa3   : > { %s670_s4 = sand.u32 1, %s4208_s5  }
  0xa4   : > { %s671_s6 = scalar_lea.sflag [#allocation10], %s670_s4 }
  0xa5   : > { %3212 = dma.done.wait (%p3560_p4), %s671_s6, 128  }
  0xa6   : > { %3214 = vsyncadd (%p3560_p4), %s671_s6, 4294967168  ;;  %s4209_s27 = sld [smem:[#allocation24_spill]] }
  0xac   : > { %s681_s17 = sand.u32 1, %s4209_s27  }
  0xad   : > { %s3685_s13 = sshll.u32 %s681_s17, 3 }
  0xae   : > { %3216 = dma.done.wait (%p3520_p3), %s671_s6, 128  }
  0xaf   : > { %3218 = vsyncadd (%p3520_p3), %s671_s6, 4294967168  ;;  %s689_s0 = scalar_lea.sflag [#allocation13], %s670_s4 }
  0xb0   : > { %3220 = dma.done.wait (%p3520_p3), %s689_s0, 128  }
  0xb1   : > { %3222 = vsyncadd (%p3520_p3), %s689_s0, 4294967168 }
  0xb2   : > { %3224 = dma.done.wait (%p136_p0), [#allocation13], 512  }
  0xb3   : > { %3226 = vsyncadd (%p136_p0), [#allocation13], 4294966784  ;;  %s4211_s11 = sld [smem:[#allocation23_spill]] }
  0xb4   : > { %s4212_s8 = sld [smem:[#allocation27_spill]] }
  0xb5   : > { %s4213_s22 = sld [smem:[#allocation26_spill]] }
  0xb6   : > { %s4214_s10 = sld [smem:[#allocation25_spill]] }
  0xb7   : > { %s4215_s30 = sld [smem:[#allocation39_spill]] }
  0xb8   : > { %s4216_s25 = sld [smem:[#allocation40_spill]] }
  0xb9   : > { %s4151_s23 = sand.u32 1, %s4211_s11  }
  0xba   : > { %p780_p11 = scmp.lt.s32.totalorder %s4212_s8, 1  ;;  %s3705_s4 = sshll.u32 %s4151_s23, 3 }
  0xbb   : > { %p782_p3 = scmp.lt.s32.totalorder %s4213_s22, 1  ;;  %s2485_s27 = sshll.u32 %s4213_s22, 3 }
  0xbc   : > { %p790_p4 = scmp.lt.s32.totalorder %s4214_s10, 1  ;;  %s4284_s8 = smov (!%p780_p11, %s4212_s8), 1 }
  0xbd   : > { %s783_s5 = scalar_select %p782_p3, %s4213_s22, 1 }
  0xbe   : > { %s2481_s6 = sshll.u32 %s4284_s8, 1  ;;  %s2486_s17 = sshll.u32 %s4214_s10, 3 }
  0xbf   : > { %s785_s28 = sadd.s32 %s2481_s6, %s783_s5  ;;  %s779_s12 = scalar_lea.vmem [#allocation15], %s3705_s4 }
  0xc0   : > { %s2482_s0 = sshll.u32 %s785_s28, 3  ;;  %p2487_p0 = scmp.ne.s32.totalorder %s4214_s10, 0 }
  0xc1   : > { %s3716_s1 = scalar_lea.vmem %s4215_s30, %s2482_s0  ;;  %s4218_s5 = sld [smem:[#allocation49_spill]] (!%p2487_p0) }
  0xc2   : > { %s791_s2 = scalar_select %p790_p4, %s4214_s10, 1 }
  0xc3   : > { %802 = sbr.rel (%p2487_p0) target bundleno = 1065 (0x429), region = 116  ;;  %s4219_s0 = sld [smem:[#allocation50_spill]] (!%p2487_p0) }
  0xc4   : > { %s793_s3 = sadd.s32 %s2481_s6, %s791_s2  ;;  %s3307_s26 = smov (!%p2487_p0), 104  }
  0xc5   : > { %s2484_s11 = sshll.u32 %s793_s3, 3  ;;  %s4217_s3 = sld [smem:[#allocation45_spill]] (!%p2487_p0) }
  0xc6   : > { %s3722_s24 = scalar_lea.vmem %s4216_s25, %s2484_s11  ;;  %s3305_s11 = smov (!%p2487_p0), 88  }
  0xc7   : > { %s3306_s25 = smov (!%p2487_p0), 120   ;;  %s3308_s2 = smov (!%p2487_p0), 72  }
  0xc8   : > { %v803_v0 = vld [vmem:[%s3716_s1] sm:$0xff]  ;;  %vm804_vm0 = vcmask 523264   ;;  %vm998_vm1 = vcmask 7168   ;;  %v3302_v2 = vmov -inf   ;;  %v3303_v3 = vmov 0.0   ;;  %s4220_s30 = scalar_lea.vmem [#allocation6], %s3671_s15 }
  0xc9   : > { %v805_v1 = vsel %vm804_vm0, %v803_v0, 0.0  ;;  %999 = vst.msk [vmem:[#allocation3] sm:$0xff] %vm998_vm1, %v3302_v2  ;;  %1000 = vst.msk [vmem:[#allocation3 + $0x8] sm:$0xff] %vm998_vm1, %v3302_v2  ;;  %2612 = vmatprep.subr.bf16.mxu0 %v3303_v3  ;;  %vm3304_vm2 = vmmov 0   ;;  %v2488_v17 = vld [vmem:[%s4218_s5] ss:$0 sm:$0xff] }
  0xca   : > { %1001 = vst.msk [vmem:[#allocation3 + $0x10] sm:$0xff] %vm998_vm1, %v3302_v2  ;;  %1002 = vst.msk [vmem:[#allocation3 + $0x18] sm:$0xff] %vm998_vm1, %v3302_v2  ;;  %806 = vadd.xlane.f32.xlu0 %v805_v1  ;;  %2620 = vmatprep.mubr.msk.bf16.mxu0 %vm3304_vm2, %v3303_v3  ;;  %v2489_v19 = vld [vmem:[%s4219_s0] ss:$0 sm:$0xff]  ;;  %s3309_s7 = smov 16   ;;  %s3310_s14 = smov 32  }
  0xcb   : > { %1003 = vst.msk [vmem:[#allocation4] sm:$0xff] %vm998_vm1, %v3303_v3  ;;  %1004 = vst.msk [vmem:[#allocation4 + $0x8] sm:$0xff] %vm998_vm1, %v3303_v3  ;;  %v2899_v9 = vld [vmem:[%s4217_s3 + $0x18] sm:$0xff]   ;;  %v2900_v10 = vld [vmem:[%s4217_s3 + $0x10] sm:$0xff]   ;;  %s3311_s8 = smov 48   ;;  %vm920_vm3 = vcmask 64512  }
  0xcc   : > { %1005 = vst.msk [vmem:[#allocation4 + $0x10] sm:$0xff] %vm998_vm1, %v3303_v3  ;;  %1006 = vst.msk [vmem:[#allocation4 + $0x18] sm:$0xff] %vm998_vm1, %v3303_v3  ;;  %2613 = vmatpush3.bf16.msra.mxu0 %v2899_v9  ;;  %v2901_v11 = vld [vmem:[%s4217_s3 + $0x8] sm:$0xff]   ;;  %v2902_v12 = vld [vmem:[%s4217_s3] sm:$0xff]   ;;  %s4221_s22 = scalar_lea.vmem [#allocation9], %s3671_s15  ;;  %s3312_s10 = smov 8  }
  0xcd   : > { %1007 = vst.msk [vmem:[#allocation5] sm:$0xff] %vm804_vm0, %v3303_v3  ;;  %2614 = vmatprep.subr.bf16.mxu0 %v3303_v3  ;;  %v911_v27 = vld [vmem:[%s4220_s30] sm:$0xff]  ;;  %v912_v29 = vld [vmem:[%s4221_s22] sm:$0xff]  ;;  %s3313_s15 = smov 112   ;;  %s3314_s23 = smov 80   ;;  %vm926_vm4 = vcmask 125952  }
  0xce   : > { %s3315_s5 = smov 96  }
  0xd0   : > { %2615 = vmatpush3.bf16.msra.mxu0 %v2900_v10 }
  0xd1   : > { %2616 = vmatprep.subr.bf16.mxu0 %v3303_v3 }
  0xd4   : > { %2617 = vmatpush3.bf16.msra.mxu0 %v2901_v11 }
  0xd5   : > { %2618 = vmatprep.subr.bf16.mxu0 %v3303_v3 }
  0xd8   : > { %2619 = vmatpush3.bf16.msra.mxu0 %v2902_v12 }
 0x153   : > { %v807_v4 = vpop.xlane.xlu0 %806 }
 0x154   : > { %v809_v5 = vmul.f32 0.015625, %v807_v4 }
 0x156   : > { %v810_v6 = vsub.f32 %v803_v0, %v809_v5 }
 0x158   : > { %v811_v7 = vmul.f32 %v810_v6, %v810_v6 }
 0x15a   : > { %v812_v8 = vsel %vm804_vm0, %v811_v7, 0.0 }
 0x15b   : > { %813 = vadd.xlane.f32.xlu0 %v812_v8 }
 0x1e4   : > { %v814_v13 = vpop.xlane.xlu0 %813 }
 0x1e5   : > { %v815_v14 = vmul.f32 0.015625, %v814_v13 }
 0x1e7   : > { %v816_v15 = vadd.f32 1e-05, %v815_v14 }
 0x1e9   : > { %2903 = vrsqrt.f32 %v816_v15 }
 0x1f6   : > { %v2904_v16 = vpop.eup %2903 }
 0x1f7   : > { %v818_v18 = vmul.f32 %v2904_v16, %v810_v6 }
 0x1f9   : > { %v826_v20 = vmul.f32 %v2488_v17, %v818_v18 }
 0x1fb   : > { %v834_v21 = vadd.f32 %v2489_v19, %v826_v20 }
 0x1fd   : > { %v835_v22 = vpack.c.bf16 %v834_v21, %v834_v21 }
 0x1ff   : > { %2621 = vmatmul.mubr.msk.bf16.vlgmr.msra.gmra.mxu0 %vm804_vm0, %v835_v22 }
 0x2bf   : > { %v905_v23 = vpop.f32.mrf.mxu0 }
 0x2c0   : > { %952 = vrot.lane.b32.xlu0 %v905_v23, %s3305_s11  ;;  %914 = vrot.lane.b32.xlu1 %v905_v23, %s3306_s25  ;;  %v922_v56 = vmul.f32 %v911_v27, %v905_v23 }
 0x2c1   : > { %v2622_v24 = vpop.f32.mrf.mxu0 }
 0x2c3   : > { %v908_v25 = vpop.f32.mrf.mxu0 }
 0x2c4   : > { %928 = vrot.lane.b32.xlu1 %v905_v23, %s3307_s26 }
 0x2c5   : > { %v2623_v26 = vpop.f32.mrf.mxu0 }
 0x2c8   : > { %975 = vrot.lane.b32.xlu1 %v905_v23, %s3308_s2 }
 0x2cc   : > { %933 = vrot.lane.b32.xlu1 %v911_v27, %s3309_s7 }
 0x2d0   : > { %956 = vrot.lane.b32.xlu1 %v911_v27, %s3310_s14 }
 0x2d4   : > { %979 = vrot.lane.b32.xlu1 %v911_v27, %s3311_s8 }
 0x332   : > { %v915_v28 = vpop.permute.xlu1 %914  ;;  %v953_v32 = vpop.permute.xlu0 %952 }
 0x336   : > { %v929_v30 = vpop.permute.xlu1 %928 }
 0x337   : > { %v931_v31 = vsel %vm920_vm3, %v929_v30, %v915_v28  ;;  %v955_v34 = vsel %vm920_vm3, %v953_v32, %v929_v30 }
 0x338   : > { %v937_v33 = vmul.f32 %v931_v31, %v912_v29  ;;  %v960_v37 = vmul.f32 %v955_v34, %v912_v29 }
 0x33a   : > { %939 = vrot.lane.b32.xlu1 %v937_v33, %s3309_s7  ;;  %v976_v35 = vpop.permute.xlu1 %975 }
 0x33b   : > { %v978_v36 = vsel %vm920_vm3, %v976_v35, %v953_v32 }
 0x33c   : > { %v983_v38 = vmul.f32 %v978_v36, %v912_v29 }
 0x33e   : > { %962 = vrot.lane.b32.xlu1 %v960_v37, %s3310_s14  ;;  %985 = vrot.lane.b32.xlu0 %v983_v38, %s3311_s8  ;;  %v934_v39 = vpop.permute.xlu1 %933 }
 0x33f   : > { %v936_v42 = vmul.f32 %v934_v39, %v905_v23 }
 0x342   : > { %917 = vrot.lane.b32.xlu1 %v905_v23, %s3312_s10  ;;  %v957_v40 = vpop.permute.xlu1 %956 }
 0x343   : > { %v959_v45 = vmul.f32 %v957_v40, %v905_v23 }
 0x346   : > { %v980_v41 = vpop.permute.xlu1 %979 }
 0x347   : > { %v982_v46 = vmul.f32 %v980_v41, %v905_v23 }
 0x3ac   : > { %v940_v43 = vpop.permute.xlu1 %939 }
 0x3ad   : > { %v942_v44 = vadd.f32 %v940_v43, %v936_v42 }
 0x3af   : > { %v2556_v47 = vpack.c.bf16 %v942_v44, %v942_v44 }
 0x3b0   : > { %v986_v48 = vpop.permute.xlu0 %985  ;;  %v963_v49 = vpop.permute.xlu1 %962 }
 0x3b1   : > { %v988_v50 = vadd.f32 %v986_v48, %v982_v46  ;;  %v965_v51 = vadd.f32 %v963_v49, %v959_v45  ;;  %947 = vrot.lane.b32.xlu0 %v2556_v47, %s3313_s15 }
 0x3b3   : > { %v2558_v52 = vpack.c.bf16 %v988_v50, %v988_v50  ;;  %v2557_v53 = vpack.c.bf16 %v965_v51, %v965_v51 }
 0x3b4   : > { %v918_v54 = vpop.permute.xlu1 %917 }
 0x3b5   : > { %v921_v55 = vsel %vm920_vm3, %v915_v28, %v918_v54  ;;  %993 = vrot.lane.b32.xlu0 %v2558_v52, %s3314_s23  ;;  %970 = vrot.lane.b32.xlu1 %v2557_v53, %s3315_s5 }
 0x3b6   : > { %v923_v57 = vmul.f32 %v921_v55, %v912_v29 }
 0x3b8   : > { %v924_v58 = vadd.f32 %v923_v57, %v922_v56 }
 0x3ba   : > { %v925_v59 = vpack.c.bf16 %v924_v58, %v924_v58 }
 0x3bc   : > { %927 = vst.msk [vmem:[#allocation2] sm:$0xf] %vm926_vm4, %v925_v59 }
 0x423   : > { %v948_v60 = vpop.permute.xlu0 %947 }
 0x424   : > { %951 = vst.msk [vmem:[#allocation2 + $0x4] sm:$0xf] %vm926_vm4, %v948_v60 }
 0x427   : > { %v994_v61 = vpop.permute.xlu0 %993  ;;  %v971_v62 = vpop.permute.xlu1 %970 }
 0x428   : > { %997 = vst.msk [vmem:[#allocation2 + $0xc] sm:$0xf] %vm926_vm4, %v994_v61  ;;  %974 = vst.msk [vmem:[#allocation2 + $0x8] sm:$0xf] %vm926_vm4, %v971_v62 }
 0x429 PF: > { %s1008_s28 = sadd.s32 7, %s2485_s27 }
 0x42a   : > { %p2498_p6 = scmp.gt.s32.totalorder %s2486_s17, %s1008_s28 }
 0x42b   : > { %s4224_s26 = sld [smem:[#allocation46_spill]] (!%p2498_p6)  ;;  %s3318_s0 = smov (!%p2498_p6), 88  }
 0x42c   : > { %1012 = sbr.rel (%p2498_p6) target bundleno = 2807 (0xaf7), region = 120  ;;  %s4226_s23 = sld [smem:[#allocation49_spill]] (!%p2498_p6) }
 0x42d   : > { %s4227_s28 = sld [smem:[#allocation50_spill]] (!%p2498_p6)  ;;  %s3319_s11 = smov (!%p2498_p6), 120  }
 0x42e   : > { %s3320_s25 = smov (!%p2498_p6), 104   ;;  %s3322_s2 = smov (!%p2498_p6), 16  }
 0x42f   : > { %s4229_s30 = scalar_lea.vmem (!%p2498_p6), [#allocation12], %s3685_s13  ;;  %s3323_s14 = smov (!%p2498_p6), 32  }
 0x430   : > { %s3324_s8 = smov (!%p2498_p6), 48   ;;  %s3326_s22 = smov (!%p2498_p6), 112  }
 0x431   : > { %v1013_v63 = vld [vmem:[%s3722_s24] sm:$0xff]  ;;  %vm1014_vm5 = vcmask 523264   ;;  %s4225_s7 = smov %s4224_s26  ;;  %v2907_v6 = vld [vmem:[%s4224_s26 + $0x18] sm:$0xff]   ;;  %v3316_v7 = vmov 0.0   ;;  %vm3317_vm6 = vmmov 0   ;;  %s3321_s26 = smov 72  }
 0x432   : > { %v1015_v0 = vsel %vm1014_vm5, %v1013_v63, 0.0  ;;  %2624 = vmatprep.subr.bf16.mxu0 %v3316_v7  ;;  %2632 = vmatprep.mubr.msk.bf16.mxu0 %vm3317_vm6, %v3316_v7  ;;  %v2908_v8 = vld [vmem:[%s4225_s7 + $0x10] sm:$0xff]   ;;  %v2909_v9 = vld [vmem:[%s4225_s7 + $0x8] sm:$0xff]   ;;  %v2910_v10 = vld [vmem:[%s4225_s7] sm:$0xff]   ;;  %s4228_s24 = scalar_lea.vmem [#allocation11], %s3685_s13  ;;  %vm1140_vm7 = vcmask 64512  }
 0x433   : > { %1016 = vadd.xlane.f32.xlu0 %v1015_v0  ;;  %2625 = vmatpush3.bf16.msra.mxu0 %v2907_v6  ;;  %v2499_v15 = vld [vmem:[%s4226_s23] ss:$0 sm:$0xff]  ;;  %v1122_v27 = vld [vmem:[%s4229_s30] sm:$0xff]  ;;  %s3325_s13 = smov 8   ;;  %s3327_s10 = smov 96   ;;  %vm1148_vm8 = vcmask 130048  }
 0x434   : > { %2636 = vmatprep.subr.bf16.mxu1 %v3316_v7  ;;  %2626 = vmatprep.subr.bf16.mxu0 %v3316_v7  ;;  %v2500_v17 = vld [vmem:[%s4227_s28] ss:$0 sm:$0xff]  ;;  %s3328_s15 = smov 80   ;;  %v1297_v62 = vld [vmem:[#allocation2 + $0x4] sm:$0xf]  ;;  %vm1217_vm10 = vcmask 7168  }
 0x435   : > { %2638 = vmatprep.mubr.msk.bf16.mxu1 %vm3317_vm6, %v3316_v7  ;;  %v1121_v25 = vld [vmem:[%s4228_s24] sm:$0xff]  ;;  %vm1234_vm11 = vcmask 1043456   ;;  %vm1434_vm12 = vcmask 261248   ;;  %vm1589_vm13 = vcmask 392448   ;;  %vm1744_vm14 = vcmask 523648  }
 0x436   : > { %v1147_v59 = vld [vmem:[#allocation2] sm:$0xf] }
 0x437   : > { %2627 = vmatpush3.bf16.msra.mxu0 %v2908_v8 }
 0x438   : > { %2628 = vmatprep.subr.bf16.mxu0 %v3316_v7 }
 0x43b   : > { %2629 = vmatpush3.bf16.msra.mxu0 %v2909_v9  ;;  %v1125_v9 = vstv %s2485_s27  ;;  %s3331_s27 = smov 64  }
 0x43c   : > { %2630 = vmatprep.subr.bf16.mxu0 %v3316_v7 }
 0x43f   : > { %2631 = vmatpush3.bf16.msra.mxu0 %v2910_v10  ;;  %v1129_v10 = vstv %s2486_s17 }
 0x440   : > { %2648 = vmatprep.subr.bf16.mxu0 %v3316_v7 }
 0x4bc   : > { %v1017_v1 = vpop.xlane.xlu0 %1016 }
 0x4bd   : > { %v1019_v2 = vmul.f32 0.015625, %v1017_v1 }
 0x4bf   : > { %v1020_v3 = vsub.f32 %v1013_v63, %v1019_v2  ;;  %v1452_v2 = vld [vmem:[#allocation2 + $0x8] sm:$0xf] }
 0x4c1   : > { %v1021_v4 = vmul.f32 %v1020_v3, %v1020_v3 }
 0x4c3   : > { %v1022_v5 = vsel %vm1014_vm5, %v1021_v4, 0.0  ;;  %v1607_v4 = vld [vmem:[#allocation2 + $0xc] sm:$0xf] }
 0x4c4   : > { %1023 = vadd.xlane.f32.xlu0 %v1022_v5  ;;  %v1123_v5 = vlaneseq }
 0x4c6   : > { %v1124_v6 = vshrl.u32 %v1123_v5, 7  ;;  %v1128_v8 = vand.u32 127, %v1123_v5 }
 0x54d   : > { %v1024_v11 = vpop.xlane.xlu0 %1023 }
 0x54e   : > { %v1025_v12 = vmul.f32 0.015625, %v1024_v11  ;;  %v1126_v11 = vadd.s32 %v1125_v9, %v1124_v6 }
 0x550   : > { %v1026_v13 = vadd.f32 1e-05, %v1025_v12  ;;  %v1130_v12 = vadd.s32 %v1129_v10, %v1128_v8 }
 0x552   : > { %2911 = vrsqrt.f32 %v1026_v13  ;;  %vm1131_vm9 = vcmp.ge.s32.totalorder %v1126_v11, %v1130_v12  ;;  %v3329_v13 = vmov -1e+30  }
 0x55f   : > { %v2912_v14 = vpop.eup %2911 }
 0x560   : > { %v1028_v16 = vmul.f32 %v2912_v14, %v1020_v3  ;;  %v1132_v14 = vsel %vm1131_vm9, 0.0, %v3329_v13 }
 0x562   : > { %v1036_v18 = vmul.f32 %v2499_v15, %v1028_v16 }
 0x564   : > { %v1044_v19 = vadd.f32 %v2500_v17, %v1036_v18 }
 0x566   : > { %v1045_v20 = vpack.c.bf16 %v1044_v19, %v1044_v19 }
 0x568   : > { %2633 = vmatmul.mubr.msk.bf16.vlgmr.msra.gmra.mxu0 %vm1014_vm5, %v1045_v20 }
 0x569   : > { %2650 = vmatprep.mubr.msk.bf16.mxu0 %vm3317_vm6, %v3316_v7 }
 0x628   : > { %v3795_v21 = vpop.f32.mrf.mxu0 }
 0x629   : > { %1436 = vrot.lane.b32.xlu0 %v3795_v21, %s3318_s0  ;;  %1134 = vrot.lane.b32.xlu1 %v3795_v21, %s3319_s11  ;;  %v1142_v55 = vmul.f32 %v1121_v25, %v3795_v21 }
 0x62a   : > { %v2634_v22 = vpop.f32.mrf.mxu0 }
 0x62b   : > { %v3330_v22 = vmov 0  }
 0x62c   : > { %v1118_v23 = vpop.f32.mrf.mxu0  ;;  %2905 = vset.pattern.permute.xlu0 %v3330_v22  ;;  %2906 = vset.pattern.permute.xlu1 %v3330_v22 }
 0x62d   : > { %1280 = vrot.lane.b32.xlu1 %v3795_v21, %s3320_s25 }
 0x62e   : > { %v2635_v24 = vpop.f32.mrf.mxu0 }
 0x631   : > { %1591 = vrot.lane.b32.xlu1 %v3795_v21, %s3321_s26 }
 0x635   : > { %1285 = vrot.lane.b32.xlu1 %v1121_v25, %s3322_s2 }
 0x69b   : > { %v1135_v26 = vpop.permute.xlu1 %1134  ;;  %v1437_v31 = vpop.permute.xlu0 %1436 }
 0x69f   : > { %v1281_v28 = vpop.permute.xlu1 %1280 }
 0x6a0   : > { %v1283_v29 = vsel %vm1140_vm7, %v1281_v28, %v1135_v26  ;;  %v1439_v35 = vsel %vm1140_vm7, %v1437_v31, %v1281_v28 }
 0x6a1   : > { %v1289_v30 = vmul.f32 %v1283_v29, %v1122_v27  ;;  %v1444_v36 = vmul.f32 %v1439_v35, %v1122_v27 }
 0x6a3   : > { %1291 = vrot.lane.b32.xlu1 %v1289_v30, %s3322_s2  ;;  %v1592_v32 = vpop.permute.xlu1 %1591 }
 0x6a4   : > { %v1594_v33 = vsel %vm1140_vm7, %v1592_v32, %v1437_v31 }
 0x6a5   : > { %v1599_v34 = vmul.f32 %v1594_v33, %v1122_v27 }
 0x6a7   : > { %1440 = vrot.lane.b32.xlu1 %v1121_v25, %s3323_s14  ;;  %1601 = vrot.lane.b32.xlu0 %v1599_v34, %s3324_s8  ;;  %v1286_v37 = vpop.permute.xlu1 %1285 }
 0x6a8   : > { %v1288_v38 = vmul.f32 %v1286_v37, %v3795_v21 }
 0x6ab   : > { %1446 = vrot.lane.b32.xlu1 %v1444_v36, %s3323_s14 }
 0x6af   : > { %1595 = vrot.lane.b32.xlu1 %v1121_v25, %s3324_s8 }
 0x6b3   : > { %1137 = vrot.lane.b32.xlu1 %v3795_v21, %s3325_s13 }
 0x715   : > { %v1292_v39 = vpop.permute.xlu1 %1291 }
 0x716   : > { %v1294_v40 = vadd.f32 %v1292_v39, %v1288_v38 }
 0x718   : > { %v1295_v41 = vpack.c.bf16 %v1294_v40, %v1294_v40 }
 0x719   : > { %v1441_v42 = vpop.permute.xlu1 %1440  ;;  %v1602_v49 = vpop.permute.xlu0 %1601 }
 0x71a   : > { %1299 = vrot.lane.b32.xlu0 %v1295_v41, %s3326_s22  ;;  %v1443_v43 = vmul.f32 %v1441_v42, %v3795_v21  ;;  %v1195_v41 = vld [vmem:[#allocation3] sm:$0xff] }
 0x71d   : > { %v1447_v44 = vpop.permute.xlu1 %1446 }
 0x71e   : > { %v1449_v45 = vadd.f32 %v1447_v44, %v1443_v43 }
 0x720   : > { %v1450_v46 = vpack.c.bf16 %v1449_v45, %v1449_v45  ;;  %v1348_v45 = vld [vmem:[#allocation3 + $0x8] sm:$0xff] }
 0x721   : > { %v1596_v47 = vpop.permute.xlu1 %1595 }
 0x722   : > { %v1598_v48 = vmul.f32 %v1596_v47, %v3795_v21  ;;  %1454 = vrot.lane.b32.xlu1 %v1450_v46, %s3327_s10 }
 0x724   : > { %v1604_v50 = vadd.f32 %v1602_v49, %v1598_v48  ;;  %v1503_v48 = vld [vmem:[#allocation3 + $0x10] sm:$0xff] }
 0x725   : > { %v1138_v51 = vpop.permute.xlu1 %1137 }
 0x726   : > { %v1605_v52 = vpack.c.bf16 %v1604_v50, %v1604_v50  ;;  %v1141_v53 = vsel %vm1140_vm7, %v1135_v26, %v1138_v51  ;;  %v1146_v51 = vpack.c.bf16 %v3795_v21, %v3795_v21 }
 0x727   : > { %v1143_v54 = vmul.f32 %v1141_v53, %v1122_v27 }
 0x728   : > { %1609 = vrot.lane.b32.xlu0 %v1605_v52, %s3328_s15  ;;  %v3862_v52 = vld [vmem:[#allocation3 + $0x18] sm:$0xff] }
 0x729   : > { %v1144_v56 = vadd.f32 %v1143_v54, %v1142_v55 }
 0x72b   : > { %v1145_v57 = vpack.c.bf16 %v1144_v56, %v1144_v56 }
 0x72d   : > { %v1153_v58 = vsel %vm1148_vm8, %v1145_v57, 0 }
 0x72e   : > { %2637 = vmatpush3.bf16.xpose.msra.mxu1 %v1153_v58 }
 0x72f   : > { %2642 = vmatprep.subr.bf16.mxu1 %v3316_v7 }
 0x735   : > { %2639 = vmatmul.mubr.msk.bf16.vlgmr.msra.gmra.mxu1 %vm1148_vm8, %v1147_v59 }
 0x736   : > { %2644 = vmatprep.mubr.msk.bf16.mxu1 %vm3317_vm6, %v3316_v7 }
 0x78c   : > { %v1300_v60 = vpop.permute.xlu0 %1299 }
 0x78d   : > { %v1305_v61 = vsel %vm1148_vm8, %v1300_v60, 0 }
 0x78e   : > { %2649 = vmatpush3.bf16.xpose.msra.mxu0 %v1305_v61 }
 0x78f   : > { %2660 = vmatprep.subr.bf16.mxu0 %v3316_v7 }
 0x794   : > { %v1455_v63 = vpop.permute.xlu1 %1454 }
 0x795   : > { %v1460_v0 = vsel %vm1148_vm8, %v1455_v63, 0  ;;  %2651 = vmatmul.mubr.msk.bf16.vlgmr.msra.gmra.mxu0 %vm1148_vm8, %v1297_v62 }
 0x796   : > { %2661 = vmatpush3.bf16.xpose.msra.mxu0 %v1460_v0  ;;  %2662 = vmatprep.mubr.msk.bf16.mxu0 %vm3317_vm6, %v3316_v7 }
 0x797   : > { %2672 = vmatprep.subr.bf16.mxu0 %v3316_v7 }
 0x79a   : > { %v1610_v1 = vpop.permute.xlu0 %1609 }
 0x79b   : > { %v1615_v3 = vsel %vm1148_vm8, %v1610_v1, 0 }
 0x79d   : > { %2663 = vmatmul.mubr.msk.bf16.vlgmr.msra.gmra.mxu0 %vm1148_vm8, %v1452_v2 }
 0x79e   : > { %2673 = vmatpush3.bf16.xpose.msra.mxu0 %v1615_v3  ;;  %2674 = vmatprep.mubr.msk.bf16.mxu0 %vm3317_vm6, %v3316_v7 }
 0x7a5   : > { %2675 = vmatmul.mubr.msk.bf16.vlgmr.msra.gmra.mxu0 %vm1148_vm8, %v1607_v4 }
 0x7f5   : > { %v1189_v15 = vpop.f32.mrf.mxu1 }
 0x7f6   : > { %v3841_v16 = vadd.f32 %v1189_v15, %v1132_v14 }
 0x7f7   : > { %v2640_v17 = vpop.f32.mrf.mxu1 }
 0x7f8   : > { %v1196_v18 = vsel %vm1140_vm7, %v3841_v16, -inf }
 0x7f9   : > { %1197 = vmax.xlane.f32.xlu1 %v1196_v18  ;;  %v1192_v19 = vpop.f32.mrf.mxu1 }
 0x7fb   : > { %v2641_v20 = vpop.f32.mrf.mxu1 }
 0x855   : > { %v1341_v23 = vpop.f32.mrf.mxu0 }
 0x856   : > { %v3845_v24 = vadd.f32 %v1341_v23, %v1132_v14 }
 0x857   : > { %v2652_v25 = vpop.f32.mrf.mxu0 }
 0x858   : > { %v1349_v26 = vsel %vm1140_vm7, %v3845_v24, -inf }
 0x859   : > { %1350 = vmax.xlane.f32.xlu0 %v1349_v26  ;;  %v1344_v27 = vpop.f32.mrf.mxu0 }
 0x85b   : > { %v2653_v28 = vpop.f32.mrf.mxu0 }
 0x85d   : > { %v1496_v29 = vpop.f32.mrf.mxu0 }
 0x85e   : > { %v3849_v30 = vadd.f32 %v1496_v29, %v1132_v14 }
 0x85f   : > { %v2664_v31 = vpop.f32.mrf.mxu0 }
 0x860   : > { %v1504_v32 = vsel %vm1140_vm7, %v3849_v30, -inf }
 0x861   : > { %1505 = vmax.xlane.f32.xlu0 %v1504_v32  ;;  %v1499_v33 = vpop.f32.mrf.mxu0 }
 0x863   : > { %v2665_v34 = vpop.f32.mrf.mxu0 }
 0x864   : > { %v1211_v34 = vld [vmem:[#allocation4] sm:$0xff] }
 0x865   : > { %v1651_v35 = vpop.f32.mrf.mxu0 }
 0x866   : > { %v3853_v36 = vadd.f32 %v1651_v35, %v1132_v14 }
 0x867   : > { %v2676_v37 = vpop.f32.mrf.mxu0 }
 0x868   : > { %v1659_v38 = vsel %vm1140_vm7, %v3853_v36, -inf }
 0x869   : > { %v1654_v39 = vpop.f32.mrf.mxu0  ;;  %1660 = vmax.xlane.f32.xlu1 %v1659_v38 }
 0x86b   : > { %v2677_v40 = vpop.f32.mrf.mxu0 }
 0x86c   : > { %v1365_v40 = vld [vmem:[#allocation4 + $0x8] sm:$0xff] }
 0x882   : > { %v1198_v42 = vpop.xlane.xlu1 %1197 }
 0x883   : > { %v1199_v43 = vmax.f32 %v1195_v41, %v1198_v42 }
 0x885   : > { %v1200_v44 = vsub.f32 %v1195_v41, %v1199_v43  ;;  %1219 = vst.msk [vmem:[#allocation3] sm:$0xff] %vm1217_vm10, %v1199_v43  ;;  %1205 = vperm.xlu0 %2905, %v1199_v43  }
 0x887   : > { %v1201_v54 = vmul.f32 1.442695, %v1200_v44  ;;  %v1520_v44 = vld [vmem:[#allocation4 + $0x10] sm:$0xff] }
 0x889   : > { %2913 = vpow2.f32 %v1201_v54 }
 0x896   : > { %v3876_v61 = vpop.eup %2913 }
 0x897   : > { %v1212_v35 = vmul.f32 %v3876_v61, %v1211_v34 }
 0x8e2   : > { %v1351_v46 = vpop.xlane.xlu0 %1350 }
 0x8e3   : > { %v1352_v47 = vmax.f32 %v1348_v45, %v1351_v46 }
 0x8e5   : > { %1372 = vst.msk [vmem:[#allocation3 + $0x8] sm:$0xff] %vm1217_vm10, %v1352_v47  ;;  %1358 = vperm.xlu1 %2906, %v1352_v47   ;;  %v1353_v1 = vsub.f32 %v1348_v45, %v1352_v47 }
 0x8e7   : > { %v1354_v2 = vmul.f32 1.442695, %v1353_v1 }
 0x8ea   : > { %v1506_v49 = vpop.xlane.xlu0 %1505 }
 0x8eb   : > { %v1507_v50 = vmax.f32 %v1503_v48, %v1506_v49 }
 0x8ed   : > { %1527 = vst.msk [vmem:[#allocation3 + $0x10] sm:$0xff] %vm1217_vm10, %v1507_v50  ;;  %1513 = vperm.xlu1 %2906, %v1507_v50   ;;  %v1508_v55 = vsub.f32 %v1503_v48, %v1507_v50  ;;  %v1220_v48 = vld [vmem:[#allocation5] sm:$0xff] }
 0x8ef   : > { %v1509_v21 = vmul.f32 1.442695, %v1508_v55 }
 0x8f1   : > { %1229 = vrot.lane.b32.xlu1 %v1146_v51, %s3331_s27  ;;  %2915 = vpow2.f32 %v1509_v21 }
 0x8f2   : > { %v1661_v53 = vpop.xlane.xlu1 %1660 }
 0x8f3   : > { %v3865_v56 = vmax.f32 %v3862_v52, %v1661_v53 }
 0x8f5   : > { %1381 = vrot.lane.b32.xlu1 %v1146_v51, %s3324_s8  ;;  %v1663_v57 = vsub.f32 %v3862_v52, %v3865_v56  ;;  %1682 = vst.msk [vmem:[#allocation3 + $0x18] sm:$0xff] %vm1217_vm10, %v3865_v56 }
 0x8f7   : > { %v1664_v29 = vmul.f32 1.442695, %v1663_v57 }
 0x8f9   : > { %1668 = vperm.xlu1 %2906, %v3865_v56  }
 0x8fd   : > { %1536 = vrot.lane.b32.xlu1 %v1146_v51, %s3323_s14 }
 0x8fe   : > { %v3879_v62 = vpop.eup %2915 }
 0x8ff   : > { %v1521_v45 = vmul.f32 %v3879_v62, %v1520_v44 }
 0x900   : > { %v1206_v58 = vpop.permute.xlu0 %1205 }
 0x901   : > { %v1208_v59 = vsub.f32 %v3841_v16, %v1206_v58  ;;  %1691 = vrot.lane.b32.xlu1 %v1146_v51, %s3322_s2 }
 0x903   : > { %v1209_v60 = vmul.f32 1.442695, %v1208_v59 }
 0x905   : > { %2917 = vpow2.f32 %v1209_v60  ;;  %1223 = vperm.xlu1 %2906, %v3876_v61  }
 0x906   : > { %2919 = vpow2.f32 %v1354_v2 }
 0x909   : > { %1531 = vperm.xlu1 %2906, %v3879_v62  }
 0x912   : > { %v2918_v63 = vpop.eup %2917 }
 0x913   : > { %v1213_v0 = vsel %vm1140_vm7, %v2918_v63, 0.0  ;;  %v2920_v3 = vpop.eup %2919  ;;  %v1227_v13 = vpack.c.bf16 %v2918_v63, %v2918_v63 }
 0x914   : > { %1214 = vadd.xlane.f32.xlu0 %v1213_v0  ;;  %v1366_v41 = vmul.f32 %v2920_v3, %v1365_v40 }
 0x92a   : > { %1376 = vperm.xlu0 %2905, %v2920_v3  }
 0x960   : > { %v1359_v4 = vpop.permute.xlu1 %1358 }
 0x961   : > { %v1361_v5 = vsub.f32 %v3845_v24, %v1359_v4 }
 0x963   : > { %v1362_v6 = vmul.f32 1.442695, %v1361_v5 }
 0x965   : > { %2921 = vpow2.f32 %v1362_v6 }
 0x968   : > { %v1514_v8 = vpop.permute.xlu1 %1513 }
 0x969   : > { %v1516_v9 = vsub.f32 %v3849_v30, %v1514_v8 }
 0x96b   : > { %v1517_v10 = vmul.f32 1.442695, %v1516_v9 }
 0x96c   : > { %v1230_v11 = vpop.permute.xlu1 %1229 }
 0x96d   : > { %2923 = vpow2.f32 %v1517_v10  ;;  %v1236_v12 = vsel %vm1234_vm11, %v1230_v11, 0 }
 0x96e   : > { %2643 = vmatpush3.bf16.msra.mxu1 %v1236_v12  ;;  %v1675_v12 = vld [vmem:[#allocation4 + $0x18] sm:$0xff] }
 0x96f   : > { %2654 = vmatprep.subr.bf16.mxu1 %v3316_v7 }
 0x970   : > { %v1382_v14 = vpop.permute.xlu1 %1381 }
 0x971   : > { %v1387_v15 = vsel %vm1234_vm11, %v1382_v14, 0  ;;  %2645 = vmatmul.mubr.msk.bf16.vlgmr.msra.gmra.mxu1 %vm1140_vm7, %v1227_v13 }
 0x972   : > { %v2922_v16 = vpop.eup %2921  ;;  %2655 = vmatpush3.bf16.msra.mxu1 %v1387_v15  ;;  %2656 = vmatprep.mubr.msk.bf16.mxu1 %vm3317_vm6, %v3316_v7 }
 0x973   : > { %v1367_v17 = vsel %vm1140_vm7, %v2922_v16, 0.0  ;;  %2666 = vmatprep.subr.bf16.mxu1 %v3316_v7  ;;  %v1380_v22 = vpack.c.bf16 %v2922_v16, %v2922_v16 }
 0x974   : > { %1368 = vadd.xlane.f32.xlu1 %v1367_v17  ;;  %v1669_v18 = vpop.permute.xlu1 %1668 }
 0x975   : > { %v1671_v19 = vsub.f32 %v3853_v36, %v1669_v18 }
 0x977   : > { %v1672_v20 = vmul.f32 1.442695, %v1671_v19 }
 0x978   : > { %v1537_v23 = vpop.permute.xlu1 %1536 }
 0x979   : > { %2925 = vpow2.f32 %v1672_v20  ;;  %v1542_v24 = vsel %vm1234_vm11, %v1537_v23, 0  ;;  %2657 = vmatmul.mubr.msk.bf16.vlgmr.msra.gmra.mxu1 %vm1140_vm7, %v1380_v22 }
 0x97a   : > { %v2924_v25 = vpop.eup %2923  ;;  %2667 = vmatpush3.bf16.msra.mxu1 %v1542_v24  ;;  %2668 = vmatprep.mubr.msk.bf16.mxu1 %vm3317_vm6, %v3316_v7  ;;  %2927 = vpow2.f32 %v1664_v29 }
 0x97b   : > { %v1522_v26 = vsel %vm1140_vm7, %v2924_v25, 0.0  ;;  %2678 = vmatprep.subr.bf16.mxu1 %v3316_v7  ;;  %v1535_v28 = vpack.c.bf16 %v2924_v25, %v2924_v25 }
 0x97c   : > { %1523 = vadd.xlane.f32.xlu0 %v1522_v26  ;;  %v1692_v27 = vpop.permute.xlu1 %1691 }
 0x97d   : > { %v1697_v30 = vsel %vm1234_vm11, %v1692_v27, 0 }
 0x980   : > { %v1224_v38 = vpop.permute.xlu1 %1223 }
 0x981   : > { %2669 = vmatmul.mubr.msk.bf16.vlgmr.msra.gmra.mxu1 %vm1140_vm7, %v1535_v28  ;;  %v1226_v49 = vmul.f32 %v1224_v38, %v1220_v48 }
 0x982   : > { %2679 = vmatpush3.bf16.msra.mxu1 %v1697_v30  ;;  %2680 = vmatprep.mubr.msk.bf16.mxu1 %vm3317_vm6, %v3316_v7 }
 0x984   : > { %v1532_v39 = vpop.permute.xlu1 %1531 }
 0x986   : > { %v2926_v31 = vpop.eup %2925 }
 0x987   : > { %v1690_v32 = vpack.c.bf16 %v2926_v31, %v2926_v31  ;;  %v2928_v33 = vpop.eup %2927  ;;  %v1677_v2 = vsel %vm1140_vm7, %v2926_v31, 0.0 }
 0x988   : > { %v1676_v13 = vmul.f32 %v2928_v33, %v1675_v12 }
 0x989   : > { %2681 = vmatmul.mubr.msk.bf16.vlgmr.msra.gmra.mxu1 %vm1140_vm7, %v1690_v32 }
 0x992   : > { %1686 = vperm.xlu0 %2905, %v2928_v33  }
 0x99d   : > { %v1215_v36 = vpop.xlane.xlu0 %1214 }
 0x99e   : > { %v1216_v37 = vadd.f32 %v1215_v36, %v1212_v35 }
 0x9a0   : > { %1218 = vst.msk [vmem:[#allocation4] sm:$0xff] %vm1217_vm10, %v1216_v37 }
 0x9a5   : > { %v1377_v43 = vpop.permute.xlu0 %1376 }
 0x9fd   : > { %v1369_v42 = vpop.xlane.xlu1 %1368 }
 0x9fe   : > { %v1370_v7 = vadd.f32 %v1369_v42, %v1366_v41 }
 0xa00   : > { %1371 = vst.msk [vmem:[#allocation4 + $0x8] sm:$0xff] %vm1217_vm10, %v1370_v7 }
 0xa05   : > { %v1524_v46 = vpop.xlane.xlu0 %1523 }
 0xa06   : > { %v1525_v47 = vadd.f32 %v1524_v46, %v1521_v45 }
 0xa08   : > { %1526 = vst.msk [vmem:[#allocation4 + $0x10] sm:$0xff] %vm1217_vm10, %v1525_v47 }
 0xa0d   : > { %v1687_v17 = vpop.permute.xlu0 %1686 }
 0xa31   : > { %v1272_v50 = vpop.f32.mrf.mxu1 }
 0xa32   : > { %v1278_v51 = vadd.f32 %v1272_v50, %v1226_v49 }
 0xa33   : > { %v2646_v52 = vpop.f32.mrf.mxu1 }
 0xa34   : > { %1279 = vst.msk [vmem:[#allocation5] sm:$0xff] %vm1148_vm8, %v1278_v51 }
 0xa35   : > { %v1275_v53 = vpop.f32.mrf.mxu1 }
 0xa37   : > { %v2647_v54 = vpop.f32.mrf.mxu1 }
 0xa39   : > { %v1423_v55 = vpop.f32.mrf.mxu1 }
 0xa3a   : > { %1430 = vrot.lane.b32.xlu1 %v1423_v55, %s3322_s2 }
 0xa3b   : > { %v2658_v56 = vpop.f32.mrf.mxu1  ;;  %v1373_v3 = vld [vmem:[#allocation5] sm:$0xff] }
 0xa3c   : > { %v1379_v4 = vmul.f32 %v1377_v43, %v1373_v3 }
 0xa3d   : > { %v1426_v57 = vpop.f32.mrf.mxu1 }
 0xa3f   : > { %v2659_v21 = vpop.f32.mrf.mxu1 }
 0xa41   : > { %v1578_v58 = vpop.f32.mrf.mxu1 }
 0xa42   : > { %1585 = vrot.lane.b32.xlu1 %v1578_v58, %s3323_s14 }
 0xa43   : > { %v2670_v59 = vpop.f32.mrf.mxu1 }
 0xa45   : > { %v1581_v60 = vpop.f32.mrf.mxu1 }
 0xa47   : > { %v2671_v61 = vpop.f32.mrf.mxu1 }
 0xa49   : > { %v1733_v62 = vpop.f32.mrf.mxu1 }
 0xa4b   : > { %v2682_v63 = vpop.f32.mrf.mxu1 }
 0xa4d   : > { %v1736_v0 = vpop.f32.mrf.mxu1 }
 0xa4f   : > { %v2683_v1 = vpop.f32.mrf.mxu1 }
 0xa66   : > { %1678 = vadd.xlane.f32.xlu1 %v1677_v2 }
 0xa77   : > { %1740 = vrot.lane.b32.xlu1 %v1733_v62, %s3324_s8 }
 0xaac   : > { %v1431_v5 = vpop.permute.xlu1 %1430 }
 0xaad   : > { %v1433_v6 = vadd.f32 %v1431_v5, %v1379_v4 }
 0xaaf   : > { %1435 = vst.msk [vmem:[#allocation5] sm:$0xff] %vm1434_vm12, %v1433_v6 }
 0xab4   : > { %v1586_v10 = vpop.permute.xlu1 %1585 }
 0xab6   : > { %v1528_v8 = vld [vmem:[#allocation5] sm:$0xff] }
 0xab7   : > { %v1534_v9 = vmul.f32 %v1532_v39, %v1528_v8 }
 0xab9   : > { %v1588_v11 = vadd.f32 %v1586_v10, %v1534_v9 }
 0xabb   : > { %1590 = vst.msk [vmem:[#allocation5] sm:$0xff] %vm1589_vm13, %v1588_v11 }
 0xac2   : > { %v1683_v15 = vld [vmem:[#allocation5] sm:$0xff] }
 0xac3   : > { %v1689_v18 = vmul.f32 %v1687_v17, %v1683_v15 }
 0xaef   : > { %v1679_v14 = vpop.xlane.xlu1 %1678 }
 0xaf0   : > { %v1680_v16 = vadd.f32 %v1679_v14, %v1676_v13 }
 0xaf2   : > { %1681 = vst.msk [vmem:[#allocation4 + $0x18] sm:$0xff] %vm1217_vm10, %v1680_v16 }
 0xaf3   : > { %v1741_v19 = vpop.permute.xlu1 %1740 }
 0xaf4   : > { %v1743_v20 = vadd.f32 %v1741_v19, %v1689_v18 }
 0xaf6   : > { %1745 = vst.msk [vmem:[#allocation5] sm:$0xff] %vm1744_vm14, %v1743_v20 }
 0xaf7 PF: > { %s4232_s17 = sld [smem:[#allocation25_spill]] }
 0xafd   : > { %p2514_p1 = scmp.ne.s32.totalorder %s4232_s17, 1 }
 0xafe   : > { %s4233_s28 = sld [smem:[#allocation49_spill]] (!%p2514_p1) }
 0xaff   : > { %1749 = sbr.rel (%p2514_p1) target bundleno = 3938 (0xf62), region = 124  ;;  %s4234_s25 = sld [smem:[#allocation48_spill]] (!%p2514_p1) }
 0xb00   : > { %s4235_s2 = sld [smem:[#allocation50_spill]] (!%p2514_p1) }
 0xb01   : > { %s4236_s8 = sld [smem:[#allocation53_spill]] (!%p2514_p1) }
 0xb02   : > { %s4238_s13 = sld [smem:[#allocation52_spill]] (!%p2514_p1) }
 0xb03   : > { %s4239_s15 = sld [smem:[#allocation55_spill]] (!%p2514_p1) }
 0xb04   : > { %v1783_v22 = vld [vmem:[#allocation4] sm:$0xff]  ;;  %v1795_v23 = vld [vmem:[#allocation4 + $0x8] sm:$0xff]  ;;  %v1807_v24 = vld [vmem:[#allocation4 + $0x10] sm:$0xff]  ;;  %v3332_v25 = vmov 0   ;;  %v3333_v32 = vmov 0.0   ;;  %vm1751_vm15 = vcmask 523264  }
 0xb05   : > { %2929 = vset.pattern.permute.xlu0 %v3332_v25  ;;  %2963 = vrcp.f32 %v1783_v22  ;;  %2930 = vset.pattern.permute.xlu1 %v3332_v25  ;;  %v1819_v26 = vld [vmem:[#allocation4 + $0x18] sm:$0xff]  ;;  %v2931_v31 = vld [vmem:[#allocation14 + $0x18] sm:$0xff]   ;;  %v2933_v34 = vld [vmem:[#allocation14 + $0x8] sm:$0xff]   ;;  %vm3334_vm0 = vmmov 0   ;;  %vm1791_vm1 = vcmask 130048   ;;  %vm1803_vm2 = vcmask 261248  }
 0xb06   : > { %2965 = vrcp.f32 %v1795_v23  ;;  %2684 = vmatprep.subr.bf16.mxu1 %v3333_v32  ;;  %v2932_v33 = vld [vmem:[#allocation14 + $0x10] sm:$0xff]   ;;  %v1750_v35 = vld [vmem:[%s3716_s1] sm:$0xff]  ;;  %2692 = vmatprep.mubr.msk.bf16.mxu1 %vm3334_vm0, %v3333_v32  ;;  %v2934_v36 = vld [vmem:[#allocation14] sm:$0xff]   ;;  %vm1815_vm3 = vcmask 392448   ;;  %vm1827_vm4 = vcmask 523648   ;;  %s4240_s14 = sld [smem:[#allocation54_spill]] }
 0xb07   : > { %2967 = vrcp.f32 %v1807_v24  ;;  %2685 = vmatpush3.bf16.msra.mxu1 %v2931_v31  ;;  %v1752_v37 = vsel %vm1751_vm15, %v1750_v35, 0.0  ;;  %v1782_v38 = vld [vmem:[#allocation5] sm:$0xff]  ;;  %v2515_v60 = vld [vmem:[%s4233_s28] ss:$0 sm:$0xff]  ;;  %v2940_v16 = vld [vmem:[%s4236_s8 + $0x24] ss:$8 sps:$4 sm:$0xff]  }
 0xb08   : > { %2969 = vrcp.f32 %v1819_v26  ;;  %2686 = vmatprep.subr.bf16.mxu1 %v3333_v32  ;;  %v2517_v62 = vld [vmem:[%s4234_s25] ss:$0 sm:$0xff]  ;;  %v2937_v14 = vld [vmem:[%s4236_s8 + $0x34] ss:$8 sps:$4 sm:$0xff]   ;;  %v2935_v15 = vld [vmem:[%s4236_s8 + $0x30] ss:$8 sps:$4 sm:$0xff]  }
 0xb09   : > { %v2516_v63 = vld [vmem:[%s4235_s2] ss:$0 sm:$0xff]  ;;  %v2943_v18 = vld [vmem:[%s4236_s8 + $0x14] ss:$8 sps:$4 sm:$0xff]   ;;  %v2941_v19 = vld [vmem:[%s4236_s8 + $0x10] ss:$8 sps:$4 sm:$0xff]  }
 0xb0a   : > { %v2938_v17 = vld [vmem:[%s4236_s8 + $0x20] ss:$8 sps:$4 sm:$0xff]   ;;  %v2946_v20 = vld [vmem:[%s4236_s8 + $0x4] ss:$8 sps:$4 sm:$0xff]   ;;  %s4237_s2 = sld [smem:[#allocation51_spill]] }
 0xb0b   : > { %2687 = vmatpush3.bf16.msra.mxu1 %v2932_v33  ;;  %v2944_v22 = vld [vmem:[%s4236_s8] ss:$8 sps:$4 sm:$0xff]   ;;  %v2947_v33 = vld [vmem:[%s4239_s15 + $0x78] sm:$0xff]   ;;  %s4241_s10 = sld [smem:[#allocation56_spill]] }
 0xb0c   : > { %2688 = vmatprep.subr.bf16.mxu1 %v3333_v32  ;;  %2590 = vmatprep.subr.bf16.mxu0 %v2947_v33 }
 0xb0f   : > { %2689 = vmatpush3.bf16.msra.mxu1 %v2933_v34  ;;  %v2948_v34 = vld [vmem:[%s4239_s15 + $0x38] sm:$0xff]  }
 0xb10   : > { %2690 = vmatprep.subr.bf16.mxu1 %v3333_v32  ;;  %2591 = vmatpush3.bf16.msra.mxu0 %v2948_v34 }
 0xb12   : > { %v2964_v27 = vpop.eup %2963 }
 0xb13   : > { %v2966_v28 = vpop.eup %2965  ;;  %1787 = vperm.xlu0 %2929, %v2964_v27   ;;  %2691 = vmatpush3.bf16.msra.mxu1 %v2934_v36  ;;  %v2523_v27 = vld [vmem:[%s4237_s2] ss:$0 sm:$0xff]  ;;  %v2950_v36 = vld [vmem:[%s4239_s15 + $0x30] sm:$0xff]  }
 0xb14   : > { %v2968_v29 = vpop.eup %2967  ;;  %2015 = vmatprep.subr.bf16.mxu1 %v2937_v14 }
 0xb15   : > { %1811 = vperm.xlu1 %2930, %v2968_v29   ;;  %v2970_v30 = vpop.eup %2969  ;;  %v2524_v29 = vld [vmem:[%s4238_s13] ss:$0 sm:$0xff] }
 0xb17   : > { %1799 = vperm.xlu0 %2929, %v2966_v28  }
 0xb19   : > { %1823 = vperm.xlu1 %2930, %v2970_v30  }
 0xb36   : > { %1753 = vadd.xlane.f32.xlu0 %v1752_v37  ;;  %v2951_v37 = vld [vmem:[%s4239_s15 + $0x68] sm:$0xff]  }
 0xb8e   : > { %v1788_v39 = vpop.permute.xlu0 %1787 }
 0xb8f   : > { %v1790_v40 = vmul.f32 %v1788_v39, %v1782_v38  ;;  %v2952_v38 = vld [vmem:[%s4239_s15 + $0x28] sm:$0xff]   ;;  %v2953_v39 = vld [vmem:[%s4239_s15 + $0x60] sm:$0xff]  }
 0xb90   : > { %v1812_v43 = vpop.permute.xlu1 %1811 }
 0xb91   : > { %1792 = vst.msk [vmem:[#allocation5] sm:$0xff] %vm1791_vm1, %v1790_v40  ;;  %v2954_v40 = vld [vmem:[%s4239_s15 + $0x20] sm:$0xff]  }
 0xb92   : > { %v1800_v41 = vpop.permute.xlu0 %1799 }
 0xb94   : > { %v1824_v46 = vpop.permute.xlu1 %1823 }
 0xb98   : > { %v1793_v42 = vld [vmem:[#allocation5] sm:$0xff] }
 0xb99   : > { %v1802_v7 = vmul.f32 %v1800_v41, %v1793_v42  ;;  %v2955_v41 = vld [vmem:[%s4239_s15 + $0x58] sm:$0xff]  }
 0xb9a   : > { %v2956_v42 = vld [vmem:[%s4239_s15 + $0x18] sm:$0xff]  }
 0xb9b   : > { %1804 = vst.msk [vmem:[#allocation5] sm:$0xff] %vm1803_vm2, %v1802_v7  ;;  %v2957_v7 = vld [vmem:[%s4239_s15 + $0x50] sm:$0xff]  }
 0xba2   : > { %v1805_v44 = vld [vmem:[#allocation5] sm:$0xff] }
 0xba3   : > { %v1814_v45 = vmul.f32 %v1812_v43, %v1805_v44  ;;  %v2958_v43 = vld [vmem:[%s4239_s15 + $0x10] sm:$0xff]   ;;  %v2959_v44 = vld [vmem:[%s4239_s15 + $0x48] sm:$0xff]  }
 0xba5   : > { %1816 = vst.msk [vmem:[#allocation5] sm:$0xff] %vm1815_vm3, %v1814_v45  ;;  %v2960_v45 = vld [vmem:[%s4239_s15 + $0x8] sm:$0xff]  }
 0xbac   : > { %v1817_v47 = vld [vmem:[#allocation5] sm:$0xff] }
 0xbad   : > { %v1826_v48 = vmul.f32 %v1824_v46, %v1817_v47  ;;  %v2961_v46 = vld [vmem:[%s4239_s15 + $0x40] sm:$0xff]  }
 0xbae   : > { %v2962_v47 = vld [vmem:[%s4239_s15] sm:$0xff]  }
 0xbaf   : > { %1828 = vst.msk [vmem:[#allocation5] sm:$0xff] %vm1827_vm4, %v1826_v48  ;;  %v1954_v48 = vlaneseq }
 0xbb6   : > { %v1829_v49 = vld [vmem:[#allocation5] sm:$0xff] }
 0xbb7   : > { %v1830_v50 = vpack.c.bf16 %v1829_v49, %v1829_v49  ;;  %v1955_v49 = vshrl.u32 %v1954_v48, 7 }
 0xbb9   : > { %2693 = vmatmul.mubr.msk.bf16.vlgmr.msra.gmra.mxu1 %vm1751_vm15, %v1830_v50  ;;  %v1956_v50 = vsub.s32 0, %v1955_v49 }
 0xbba   : > { %2039 = vmatprep.mubr.bf16.mxu1 %v3332_v25  ;;  %2016 = vmatpush1.bf16.msra.mxu1 %v2935_v15 }
 0xbbb   : > { %2017 = vmatprep.subr.bf16.mxu1 %v2940_v16 }
 0xbbe   : > { %2018 = vmatpush1.bf16.msra.mxu1 %v2938_v17 }
 0xbbf   : > { %v1754_v51 = vpop.xlane.xlu0 %1753  ;;  %2019 = vmatprep.subr.bf16.mxu1 %v2943_v18  ;;  %v2534_v18 = vld [vmem:[%s4241_s10] ss:$0 sm:$0xff] }
 0xbc0   : > { %v1756_v52 = vmul.f32 0.015625, %v1754_v51  ;;  %v1952_v51 = vld [vmem:[%s4240_s14] sm:$0x3] }
 0xbc2   : > { %v1757_v53 = vsub.f32 %v1750_v35, %v1756_v52  ;;  %2020 = vmatpush1.bf16.msra.mxu1 %v2941_v19  ;;  %v2949_v35 = vld [vmem:[%s4239_s15 + $0x70] sm:$0xff]   ;;  %v1960_v52 = vsub.s32 1, %v1955_v49 }
 0xbc3   : > { %2021 = vmatprep.subr.bf16.mxu1 %v2946_v20  ;;  %2592 = vmatprep.subr.bf16.mxu0 %v2949_v35 }
 0xbc4   : > { %v1758_v54 = vmul.f32 %v1757_v53, %v1757_v53  ;;  %2593 = vmatpush3.bf16.msra.mxu0 %v2950_v36 }
 0xbc5   : > { %2594 = vmatprep.subr.bf16.mxu0 %v2951_v37 }
 0xbc6   : > { %v1759_v55 = vsel %vm1751_vm15, %v1758_v54, 0.0  ;;  %2022 = vmatpush1.bf16.msra.mxu1 %v2944_v22  ;;  %v1961_v54 = vrot.slane %v1952_v51, %v1960_v52 }
 0xbc7   : > { %1760 = vadd.xlane.f32.xlu1 %v1759_v55 }
 0xbc8   : > { %2595 = vmatpush3.bf16.msra.mxu0 %v2952_v38 }
 0xbc9   : > { %2596 = vmatprep.subr.bf16.mxu0 %v2953_v39 }
 0xbcc   : > { %2597 = vmatpush3.bf16.msra.mxu0 %v2954_v40 }
 0xbcd   : > { %2598 = vmatprep.subr.bf16.mxu0 %v2955_v41 }
 0xbd0   : > { %2599 = vmatpush3.bf16.msra.mxu0 %v2956_v42 }
 0xbd1   : > { %2600 = vmatprep.subr.bf16.mxu0 %v2957_v7 }
 0xbd4   : > { %2601 = vmatpush3.bf16.msra.mxu0 %v2958_v43 }
 0xbd5   : > { %2602 = vmatprep.subr.bf16.mxu0 %v2959_v44 }
 0xbd8   : > { %2603 = vmatpush3.bf16.msra.mxu0 %v2960_v45 }
 0xbd9   : > { %2604 = vmatprep.subr.bf16.mxu0 %v2961_v46 }
 0xbdc   : > { %2605 = vmatpush3.bf16.msra.mxu0 %v2962_v47 }
 0xc50   : > { %v1761_v56 = vpop.xlane.xlu1 %1760 }
 0xc51   : > { %v1762_v57 = vmul.f32 0.015625, %v1761_v56 }
 0xc53   : > { %v1763_v21 = vadd.f32 1e-05, %v1762_v57 }
 0xc55   : > { %2971 = vrsqrt.f32 %v1763_v21 }
 0xc62   : > { %v2972_v58 = vpop.eup %2971 }
 0xc63   : > { %v1765_v59 = vmul.f32 %v2972_v58, %v1757_v53  ;;  %v1957_v53 = vrot.slane %v1952_v51, %v1956_v50 }
 0xc65   : > { %v1773_v61 = vmul.f32 %v2515_v60, %v1765_v59 }
 0xc67   : > { %v1781_v2 = vadd.f32 %v2516_v63, %v1773_v61 }
 0xc79   : > { %v1907_v0 = vpop.f32.mrf.mxu1 }
 0xc7a   : > { %v1908_v1 = vadd.f32 %v2517_v62, %v1907_v0 }
 0xc7b   : > { %v2694_v3 = vpop.f32.mrf.mxu1 }
 0xc7c   : > { %v1913_v4 = vadd.f32 %v1908_v1, %v1781_v2 }
 0xc7d   : > { %v1910_v5 = vpop.f32.mrf.mxu1 }
 0xc7e   : > { %v1914_v6 = vsel %vm1751_vm15, %v1913_v4, 0.0 }
 0xc7f   : > { %v2695_v8 = vpop.f32.mrf.mxu1  ;;  %1915 = vadd.xlane.f32.xlu0 %v1914_v6 }
 0xd08   : > { %v1916_v9 = vpop.xlane.xlu0 %1915 }
 0xd09   : > { %v1917_v10 = vmul.f32 0.015625, %v1916_v9 }
 0xd0b   : > { %v1918_v11 = vsub.f32 %v1913_v4, %v1917_v10 }
 0xd0d   : > { %v1919_v12 = vmul.f32 %v1918_v11, %v1918_v11 }
 0xd0f   : > { %v1920_v13 = vsel %vm1751_vm15, %v1919_v12, 0.0 }
 0xd10   : > { %1921 = vadd.xlane.f32.xlu0 %v1920_v13 }
 0xd99   : > { %v1922_v23 = vpop.xlane.xlu0 %1921 }
 0xd9a   : > { %v1923_v24 = vmul.f32 0.015625, %v1922_v23 }
 0xd9c   : > { %v1924_v25 = vadd.f32 1e-05, %v1923_v24 }
 0xd9e   : > { %2973 = vrsqrt.f32 %v1924_v25 }
 0xdab   : > { %v2974_v26 = vpop.eup %2973 }
 0xdac   : > { %v1926_v28 = vmul.f32 %v2974_v26, %v1918_v11 }
 0xdae   : > { %v1934_v30 = vmul.f32 %v2523_v27, %v1926_v28 }
 0xdb0   : > { %v3965_v31 = vadd.f32 %v2524_v29, %v1934_v30 }
 0xdb2   : > { %v1943_v32 = vpack.c.bf16 %v3965_v31, %v3965_v31 }
 0xdb4   : > { %2533 = vmatmul.mubr.msk.bf16.vlgmr.msra.gmra.mxu1 %vm1751_vm15, %v1943_v32 }
 0xe74   : > { %v2041_v55 = vpop.f32.mrf.mxu1 }
 0xe75   : > { %v2042_v56 = vadd.f32 %v2041_v55, %v1957_v53 }
 0xe76   : > { %v2043_v57 = vpop.f32.mrf.mxu1 }
 0xe77   : > { %v2050_v21 = vmul.f32 0.044715, %v2042_v56  ;;  %v2044_v58 = vadd.f32 %v2043_v57, %v1961_v54  ;;  %v2048_v10 = vmul.f32 0.5, %v2042_v56 }
 0xe78   : > { %v2045_v59 = vpop.f32.mrf.mxu1 }
 0xe79   : > { %v2052_v60 = vmul.f32 %v2050_v21, %v2042_v56  ;;  %v2051_v61 = vmul.f32 0.044715, %v2044_v58  ;;  %v2049_v11 = vmul.f32 0.5, %v2044_v58 }
 0xe7a   : > { %v2046_v62 = vpop.f32.mrf.mxu1 }
 0xe7b   : > { %v2053_v63 = vmul.f32 %v2051_v61, %v2044_v58  ;;  %v2054_v0 = vmul.f32 %v2052_v60, %v2042_v56 }
 0xe7d   : > { %v2055_v1 = vmul.f32 %v2053_v63, %v2044_v58  ;;  %v2056_v2 = vadd.f32 %v2054_v0, %v2042_v56 }
 0xe7f   : > { %v2057_v3 = vadd.f32 %v2055_v1, %v2044_v58  ;;  %v2058_v4 = vmul.f32 0.7978846, %v2056_v2 }
 0xe81   : > { %v2059_v5 = vmul.f32 0.7978846, %v2057_v3  ;;  %2975 = vtanh.f32 %v2058_v4 }
 0xe83   : > { %2977 = vtanh.f32 %v2059_v5 }
 0xe8e   : > { %v2976_v6 = vpop.eup %2975 }
 0xe8f   : > { %v2062_v8 = vadd.f32 1.0, %v2976_v6 }
 0xe90   : > { %v2978_v9 = vpop.eup %2977 }
 0xe91   : > { %v2063_v12 = vadd.f32 1.0, %v2978_v9  ;;  %v2064_v13 = vmul.f32 %v2062_v8, %v2048_v10 }
 0xe93   : > { %v2065_v14 = vmul.f32 %v2063_v12, %v2049_v11  ;;  %v2066_v16 = vpack.c.bf16 %v2064_v13, %v2064_v13 }
 0xe95   : > { %v2067_v15 = vpack.c.bf16 %v2065_v14, %v2065_v14 }
 0xe97   : > { %2235 = vmatprep.mubr.bf16.mxu0 %v2067_v15 }
 0xe98   : > { %2236 = vmatmul.mubr.bf16.vlgmr.msra.gmra.mxu0 %v2066_v16 }
 0xf58   : > { %v2606_v17 = vpop.f32.mrf.mxu0 }
 0xf5a   : > { %v2607_v19 = vpop.f32.mrf.mxu0 }
 0xf5b   : > { %v2608_v20 = vadd.f32 %v2607_v19, %v2606_v17 }
 0xf5c   : > { %v2609_v22 = vpop.f32.mrf.mxu0 }
 0xf5d   : > { %v2238_v23 = vadd.f32 %v2608_v20, %v2534_v18 }
 0xf5e   : > { %v2610_v24 = vpop.f32.mrf.mxu0 }
 0xf5f   : > { %v2243_v25 = vadd.f32 %v2238_v23, %v3965_v31 }
 0xf61   : > { %2244 = vst.msk [vmem:[%s779_s12] sm:$0xff] %vm1751_vm15, %v2243_v25 }
 0xf62 PF: > { %s4242_s23 = sld [smem:[#allocation27_spill]]  ;;  %s2261_s28 = sshll.u32 %s779_s12, 4  ;;  %s2262_s28 = int_to_ptr.vmem [resolvable:$true] %s2261_s28 }
 0xf63   : > { %s4243_s5 = sld [smem:[#allocation26_spill]]  ;;  %s3117_s13 = scalar_lea.vmem %s2262_s28, 128 }
 0xf64   : > { %s4244_s27 = sld [smem:[#allocation23_spill]]  ;;  %p3118_p10 = scmp.ne.s32.totalorder %s2262_s28, %s3117_s13 }
 0xf65   : > { %s4245_s17 = sld [smem:[#allocation33_spill]]  ;;  %s3335_s22 = smov [#allocation15]  }
 0xf66   : > { %s4246_s26 = sld [smem:[#allocation57_spill]]  ;;  %s3121_s10 = sshll.u32 %s3335_s22, 4  ;;  %s3122_s10 = int_to_ptr.vmem [resolvable:$false] %s3121_s10 }
 0xf67   : > { %p3124_p13 = scmp.lt.s32.totalorder %s2262_s28, %s3122_s10 }
 0xf68   : > { %s2552_s1 = sshll.u32 %s4242_s23, 1  ;;  %s3123_s23 = scalar_lea.vmem %s3122_s10, 256 }
 0xf69   : > { %s2257_s6 = sadd.s32 %s4243_s5, %s2552_s1  ;;  %p3125_p7 = scmp.lt.s32.totalorder %s3123_s23, %s3117_s13 }
 0xf6a   : > { %s2553_s0 = sshll.u32 %s2257_s6, 7  ;;  %s4248_s2 = sand.u32 1, %s4244_s27  }
 0xf6b   : > { %s2246_s30 = scalar_lea.sflag [#allocation8], %s4248_s2  ;;  %p4249_p2 = scmp.ne.s32.totalorder %s4245_s17, 0 }
 0xf6c   : > { %s4247_s14 = smov %s4246_s26  ;;  %s2259_s24 = scalar_lea.hbm %s4246_s26, %s2553_s0 }
 0xf6d   : > { %p3119_p5 = pnand %p3118_p10, %p4249_p2  ;;  %p3126_p9 = por %p3125_p7, %p3124_p13 }
 0xf6f   : > { %p3120_p8 = pneg %p3119_p5 }
 0xf71   : > { %p3127_p12 = pnand %p3126_p9, %p3120_p8 }
 0xf73   : > { %3130 = shalt.err (!%p3127_p12)
}
 0xf74   : > { %s3131_s12 = scalar_lea.hbm %s2259_s24, 128  ;;  %s3135_s27 = scalar_lea.hbm %s4247_s14, 512 }
 0xf75   : > { %p3132_p11 = scmp.ne.s32.totalorder %s2259_s24, %s3131_s12  ;;  %p3136_p0 = scmp.lt.s32.totalorder %s2259_s24, %s4247_s14 }
 0xf76   : > { %p3137_p6 = scmp.lt.s32.totalorder %s3135_s27, %s3131_s12 }
 0xf77   : > { %p3133_p3 = pnand %p3132_p11, %p4249_p2 }
 0xf78   : > { %p3138_p1 = por %p3137_p6, %p3136_p0 }
 0xf79   : > { %p3134_p4 = pneg %p3133_p3 }
 0xf7b   : > { %p3139_p10 = pnand %p3138_p1, %p3134_p4 }
 0xf7d   : > { %3142 = shalt.err (!%p3139_p10)
}
 0xf7e   : > { %2708 = dma.vmem_to_hbm [thread:$0]  (%p4249_p2), %s2262_s28, 128, %s2259_s24, %s2246_s30  }
 0xf7f PF: > { %s4250_s0 = sld [smem:[#allocation22_spill]]  ;;  %p2734_p5 = scmp.ge.s32.totalorder %s3293_s18, 2 }
 0xf80   : > { %s4251_s11 = sld [smem:[#allocation34_spill]] }
 0xf85   : > { %s2273_s25 = sand.u32 1, %s4250_s0  }
 0xf86   : > { %p4252_p8 = scmp.ne.s32.totalorder %s4251_s11, 0  ;;  %s2274_s26 = scalar_lea.sflag [#allocation8], %s2273_s25 }
 0xf88   : > { %p2728_p13 = pnand %p2734_p5, %p4252_p8 }
 0xf8a   : > { %p2729_p7 = pneg %p2728_p13 }
 0xf8c   : > { %3228 = dma.done.wait (%p2729_p7), %s2274_s26, 128  }
 0xf8d   : > { %3230 = vsyncadd (%p2729_p7), %s2274_s26, 4294967168  ;;  %s40_s18 = sadd.s32 1, %s3293_s18   ;;  %s4254_s27 = sld [smem:[#allocation23_spill]] }
 0xf8e   : > { %p4054_p9 = scmp.ge.s32.totalorder %s40_s18, 10   ;;  %s4255_s30 = sld [smem:[#allocation24_spill]] }
 0xf8f   : > { %s4256_s17 = sld [smem:[#allocation38_spill]]  ;;  %s4264_s28 = smov %s3241_s29 }
 0xf90   : > { %s4257_s22 = sld [smem:[#allocation28_spill]]  ;;  %s4265_s29 = smov %s3657_s9 }
 0xf91   : > { %s4258_s24 = sld [smem:[#allocation29_spill]]  ;;  %s4266_s0 = smov %s3253_s19 }
 0xf92   : > { %s4259_s23 = sld [smem:[#allocation30_spill]]  ;;  %s4267_s19 = smov %s3628_s16 }
 0xf93   : > { %s4260_s13 = sld [smem:[#allocation35_spill]]  ;;  %s4268_s1 = smov %s3261_s20 }
 0xf94   : > { %s4261_s25 = sld [smem:[#allocation36_spill]]  ;;  %s4269_s20 = smov %s3265_s21 }
 0xf95   : > { %s4262_s26 = sld [smem:[#allocation37_spill]]  ;;  %s4270_s21 = smov %s4256_s17 }
 0xf96   :  { %39 = sbr.rel (!%p4054_p9) target bundleno = 35 (0x23), region = 211 }
 0xf97   : > { %s4271_s2 = smov %s4258_s24 }
 0xf99   : > { %s4272_s24 = smov %s4260_s13 }
 0xf9b   :  { %2279 = vsyncpa [#allocation7], 1 }
 0xf9c   :  { %2281 = vsyncpa [#allocation7 + $0x1], 1 }
 0xf9d   :  { %2282 = vsyncpa [#allocation10], 1 }
 0xf9e   :  { %2284 = vsyncpa [#allocation10 + $0x1], 1 }
 0xf9f   :  { %2285 = vsyncpa [#allocation13], 1 }
 0xfa0   :  { %2287 = vsyncpa [#allocation13 + $0x1], 1 }
 0xfa1   :  { %2288 = vsyncpa [#allocation8], 1 }
 0xfa2   :  { %2290 = vsyncpa [#allocation8 + $0x1], 1 }

</bundles_post_ra>
